<compile_context>
chip_gen: v6e
topology: v6e:2x2x1
jax: 0.10.0
libtpu: 0.0.40
codegen_flags: <defaults>
</compile_context>

<pallas_src>
import jax
import jax.numpy as jnp
from jax.experimental import pallas as pl
from jax.experimental.pallas import tpu as pltpu

HIDDEN = 32        # hidden_size
NUM_DAY = 7        # seq length
NUM_FEATURE = 1    # len(data_fold)
NUM_LAYERS = 2


def lstm_kernel(x_ref, wih0_ref, whh0_ref, b0_ref,
                w1_ref, b1_ref, fcw_ref,
                fc1w_ref, outb_ref,
                out_ref):
    """Whole forward pass in one kernel (shapes are tiny -> everything fits VMEM).

    x_ref   : (B, T)     VMEM   input, feature dim (==1) squeezed away
    wih0    : (1, 4H)    VMEM   layer-0 input weights (transposed; F == 1)
    whh0    : (H, 4H)    VMEM
    b0      : (1, 4H)    VMEM   b_ih0 + b_hh0
    w1      : (2H, 4H)   VMEM   stacked [wih1; whh1] (transposed)
    b1      : (1, 4H)    VMEM   b_ih1 + b_hh1
    fcw     : (H, 1)     VMEM   fc weight, transposed
    fc1w    : (T,)       SMEM   fc1 weight as a vector over time
    outb    : (1,)       SMEM   fc_b * sum(fc1_w) + fc1_b  (combined scalar bias)
    out_ref : (B, 1)     VMEM
    """
    B, T = x_ref.shape
    H = whh0_ref.shape[0]

    x = x_ref[...]                 # (B, T)
    wih0 = wih0_ref[...]           # (1, 4H)
    whh0 = whh0_ref[...]           # (H, 4H)
    b0 = b0_ref[...]               # (1, 4H)
    w1 = w1_ref[...]               # (2H, 4H)
    b1 = b1_ref[...]               # (1, 4H)

    def cell_update(gates, c):
        # Full-vreg nonlinearities: one sigmoid + one tanh over (B, 4H),
        # then slice the PyTorch-ordered gates i, f, g, o.
        S = jax.nn.sigmoid(gates)
        Tn = jnp.tanh(gates)
        i = S[:, 0 * H:1 * H]
        f = S[:, 1 * H:2 * H]
        g = Tn[:, 2 * H:3 * H]
        o = S[:, 3 * H:4 * H]
        c_new = f * c + i * g
        h_new = o * jnp.tanh(c_new)
        return h_new, c_new

    h0 = jnp.zeros((B, H), jnp.float32)
    c0 = jnp.zeros((B, H), jnp.float32)
    h1 = jnp.zeros((B, H), jnp.float32)
    c1 = jnp.zeros((B, H), jnp.float32)
    acc_h = jnp.zeros((B, H), jnp.float32)

    # T is a compile-time constant (7): fully unroll the recurrence.
    for t in range(T):
        # Layer 0. F == 1 -> input projection is a broadcast-multiply with the
        # bias folded in; it does not depend on the recurrent state, so the
        # unrolled scheduler hoists it off the h-chain.
        xg_t = x[:, t:t + 1] * wih0 + b0                               # (B, 4H)
        g0 = xg_t + jnp.dot(h0, whh0, preferred_element_type=jnp.float32)
        h0, c0 = cell_update(g0, c0)

        # Layer 1: single fused MXU push over the stacked weights.
        hcat = jnp.concatenate([h0, h1], axis=1)                       # (B, 2H)
        g1 = jnp.dot(hcat, w1, preferred_element_type=jnp.float32) + b1
        h1, c1 = cell_update(g1, c1)

        # Deferred fc/fc1 (exact by linearity): accumulate fc1_w[t] * h1_t.
        acc_h = acc_h + fc1w_ref[t] * h1

    # out = (sum_t fc1_w[t] * h1_t) @ fc_w + fc_b * sum(fc1_w) + fc1_b
    out_ref[...] = (jnp.dot(acc_h, fcw_ref[...],
                            preferred_element_type=jnp.float32)
                    + outb_ref[0])


def init_params(key):
    H, F, T = HIDDEN, NUM_FEATURE, NUM_DAY
    ks = jax.random.split(key, 12)
    k_lstm = 1.0 / jnp.sqrt(H)
    k_fc = 1.0 / jnp.sqrt(H)
    k_fc1 = 1.0 / jnp.sqrt(T)
    u = lambda kk, shape, s: jax.random.uniform(kk, shape, jnp.float32, -s, s)
    return dict(
        wih0=u(ks[0], (4 * H, F), k_lstm),
        whh0=u(ks[1], (4 * H, H), k_lstm),
        bih0=u(ks[2], (4 * H,), k_lstm),
        bhh0=u(ks[3], (4 * H,), k_lstm),
        wih1=u(ks[4], (4 * H, H), k_lstm),
        whh1=u(ks[5], (4 * H, H), k_lstm),
        bih1=u(ks[6], (4 * H,), k_lstm),
        bhh1=u(ks[7], (4 * H,), k_lstm),
        fc_w=u(ks[8], (1, H), k_fc),
        fc_b=u(ks[9], (1,), k_fc),
        fc1_w=u(ks[10], (1, T), k_fc1),
        fc1_b=u(ks[11], (1,), k_fc1),
    )
    # NOTE: PReLU and Dropout exist in the PyTorch __init__ but are unused in
    # forward(), so they are intentionally not implemented.


def lstm_forward(x, params):
    """x: (B, T, F) batch_first, like the PyTorch module. Returns (B, 1)."""
    B, T, F = x.shape
    assert F == 1, "kernel exploits num_feature == 1 (input projection as broadcast)"

    x2d = x[:, :, 0].astype(jnp.float32)                         # (B, T)

    # Stack layer-1 input/hidden weights so the kernel does one matmul per step.
    w1_stacked = jnp.concatenate(
        [params["wih1"].T, params["whh1"].T], axis=0)             # (2H, 4H)

    fc1w = params["fc1_w"].reshape(-1).astype(jnp.float32)        # (T,)
    # Deferred-fc combined bias: fc_b * sum(fc1_w) + fc1_b (exact by linearity).
    out_bias = (params["fc_b"][0] * jnp.sum(fc1w)
                + params["fc1_b"][0]).reshape(1)                  # (1,)

    args = (
        x2d,                                                      # (B, T)
        params["wih0"].T,                                         # (1, 4H)  F==1
        params["whh0"].T,                                         # (H, 4H)
        (params["bih0"] + params["bhh0"]).reshape(1, -1),         # (1, 4H)
        w1_stacked,                                               # (2H, 4H)
        (params["bih1"] + params["bhh1"]).reshape(1, -1),         # (1, 4H)
        params["fc_w"].T,                                         # (H, 1)
        fc1w,                                                     # (T,)  SMEM
        out_bias,                                                 # (1,)  SMEM
    )

    vmem = pl.BlockSpec(memory_space=pltpu.MemorySpace.VMEM)
    smem = pl.BlockSpec(memory_space=pltpu.MemorySpace.SMEM)
    in_specs = [vmem] * 7 + [smem, smem]

    # TODO(synk): if many independent sequences are evaluated, add a batch grid
    # axis (dimension_semantics=("parallel",)) and tile B to a few hundred rows
    # per step to fill sublanes and use the second TensorCore on v7x.
    return pl.pallas_call(
        lstm_kernel,
        out_shape=jax.ShapeDtypeStruct((B, 1), jnp.float32),
        in_specs=in_specs,
        out_specs=vmem,
    )(*args)


def lstm_ref(x, params):
    """Pure-JAX reference matching PyTorch nn.LSTM + fc + squeeze + fc1."""
    B, T, F = x.shape
    H = HIDDEN
    b0 = params["bih0"] + params["bhh0"]
    b1 = params["bih1"] + params["bhh1"]

    def cell(x_t, h, c, wih, whh, b):
        gates = x_t @ wih.T + h @ whh.T + b
        i = jax.nn.sigmoid(gates[:, :H])
        f = jax.nn.sigmoid(gates[:, H:2 * H])
        g = jnp.tanh(gates[:, 2 * H:3 * H])
        o = jax.nn.sigmoid(gates[:, 3 * H:])
        c = f * c + i * g
        h = o * jnp.tanh(c)
        return h, c

    h0 = c0 = h1 = c1 = jnp.zeros((B, H), jnp.float32)
    outs = []
    for t in range(T):
        h0, c0 = cell(x[:, t], h0, c0, params["wih0"], params["whh0"], b0)
        h1, c1 = cell(h0, h1, c1, params["wih1"], params["whh1"], b1)
        outs.append(h1)
    out = jnp.stack(outs, axis=1)                       # (B, T, H)
    y = out @ params["fc_w"].T + params["fc_b"]         # (B, T, 1)
    y = jnp.squeeze(y, 2)                               # (B, T)
    return y @ params["fc1_w"].T + params["fc1_b"]      # (B, 1)


if __name__ == "__main__":
    key = jax.random.PRNGKey(0)
    k_params, k_x = jax.random.split(key)

    batch = 8
    x = jax.random.normal(k_x, (batch, NUM_DAY, NUM_FEATURE), jnp.float32)
    params = init_params(k_params)

    out = jax.block_until_ready(lstm_forward(x, params))
    ref = jax.block_until_ready(lstm_ref(x, params))

    assert out.shape == (batch, 1), out.shape
    assert jnp.allclose(out, ref, atol=1e-5, rtol=1e-5), (out, ref)
    print("KERNEL_OK")
</pallas_src>

<mosaic_0001>
module attributes {stable_mosaic.version = 11 : i64} {
  func.func @lstm_kernel(%arg0: memref<8x7xf32, #tpu.memory_space<vmem>>, %arg1: memref<1x128xf32, #tpu.memory_space<vmem>>, %arg2: memref<32x128xf32, #tpu.memory_space<vmem>>, %arg3: memref<1x128xf32, #tpu.memory_space<vmem>>, %arg4: memref<64x128xf32, #tpu.memory_space<vmem>>, %arg5: memref<1x128xf32, #tpu.memory_space<vmem>>, %arg6: memref<32x1xf32, #tpu.memory_space<vmem>>, %arg7: memref<7xf32, #tpu.memory_space<smem>>, %arg8: memref<1xf32, #tpu.memory_space<smem>>, %arg9: memref<8x1xf32, #tpu.memory_space<vmem>>) attributes {dimension_semantics = [], scalar_prefetch = 0 : i64, scratch_operands = 0 : i64, tpu.core_type = #tpu.core_type<tc>} {
    %c0 = arith.constant 0 : index
    %c0_0 = arith.constant 0 : index
    %0 = vector.load %arg0[%c0, %c0_0] : memref<8x7xf32, #tpu.memory_space<vmem>>, vector<8x7xf32>
    %c0_1 = arith.constant 0 : index
    %c0_2 = arith.constant 0 : index
    %1 = vector.load %arg1[%c0_1, %c0_2] : memref<1x128xf32, #tpu.memory_space<vmem>>, vector<1x128xf32>
    %c0_3 = arith.constant 0 : index
    %c0_4 = arith.constant 0 : index
    %2 = vector.load %arg2[%c0_3, %c0_4] : memref<32x128xf32, #tpu.memory_space<vmem>>, vector<32x128xf32>
    %c0_5 = arith.constant 0 : index
    %c0_6 = arith.constant 0 : index
    %3 = vector.load %arg3[%c0_5, %c0_6] : memref<1x128xf32, #tpu.memory_space<vmem>>, vector<1x128xf32>
    %c0_7 = arith.constant 0 : index
    %c0_8 = arith.constant 0 : index
    %4 = vector.load %arg4[%c0_7, %c0_8] : memref<64x128xf32, #tpu.memory_space<vmem>>, vector<64x128xf32>
    %c0_9 = arith.constant 0 : index
    %c0_10 = arith.constant 0 : index
    %5 = vector.load %arg5[%c0_9, %c0_10] : memref<1x128xf32, #tpu.memory_space<vmem>>, vector<1x128xf32>
    %cst = arith.constant 0.000000e+00 : f32
    %6 = vector.broadcast %cst : f32 to vector<8x32xf32>
    %cst_11 = arith.constant 0.000000e+00 : f32
    %7 = vector.broadcast %cst_11 : f32 to vector<8x32xf32>
    %cst_12 = arith.constant 0.000000e+00 : f32
    %8 = vector.broadcast %cst_12 : f32 to vector<8x32xf32>
    %cst_13 = arith.constant 0.000000e+00 : f32
    %9 = vector.broadcast %cst_13 : f32 to vector<8x32xf32>
    %cst_14 = arith.constant 0.000000e+00 : f32
    %10 = vector.broadcast %cst_14 : f32 to vector<8x32xf32>
    %11 = vector.extract_strided_slice %0 {offsets = [0, 0], sizes = [8, 1], strides = [1, 1]} : vector<8x7xf32> to vector<8x1xf32>
    %12 = vector.broadcast %11 : vector<8x1xf32> to vector<8x128xf32>
    %13 = vector.broadcast %1 : vector<1x128xf32> to vector<8x128xf32>
    %14 = arith.mulf %12, %13 : vector<8x128xf32>
    %15 = vector.broadcast %3 : vector<1x128xf32> to vector<8x128xf32>
    %16 = arith.addf %14, %15 : vector<8x128xf32>
    %cst_15 = arith.constant dense<0.000000e+00> : vector<8x128xf32>
    %17 = tpu.matmul %6, %2, %cst_15 {dimension_numbers = #tpu.dot_dimension_numbers<[1], [0], [0], [1], [0, 0, 1, 1], [], []>} : vector<8x32xf32>, vector<32x128xf32>, vector<8x128xf32> -> vector<8x128xf32>
    %18 = arith.addf %16, %17 : vector<8x128xf32>
    %19 = arith.negf %18 : vector<8x128xf32>
    %20 = math.exp %19 : vector<8x128xf32>
    %cst_16 = arith.constant 1.000000e+00 : f32
    %21 = vector.broadcast %cst_16 : f32 to vector<8x128xf32>
    %22 = arith.addf %21, %20 : vector<8x128xf32>
    %23 = arith.divf %21, %22 : vector<8x128xf32>
    %24 = math.tanh %18 : vector<8x128xf32>
    %25 = vector.extract_strided_slice %23 {offsets = [0, 0], sizes = [8, 32], strides = [1, 1]} : vector<8x128xf32> to vector<8x32xf32>
    %26 = vector.extract_strided_slice %23 {offsets = [0, 32], sizes = [8, 32], strides = [1, 1]} : vector<8x128xf32> to vector<8x32xf32>
    %27 = vector.extract_strided_slice %24 {offsets = [0, 64], sizes = [8, 32], strides = [1, 1]} : vector<8x128xf32> to vector<8x32xf32>
    %28 = vector.extract_strided_slice %23 {offsets = [0, 96], sizes = [8, 32], strides = [1, 1]} : vector<8x128xf32> to vector<8x32xf32>
    %29 = arith.mulf %26, %7 : vector<8x32xf32>
    %30 = arith.mulf %25, %27 : vector<8x32xf32>
    %31 = arith.addf %29, %30 : vector<8x32xf32>
    %32 = math.tanh %31 : vector<8x32xf32>
    %33 = arith.mulf %28, %32 : vector<8x32xf32>
    %34 = tpu.concatenate %33, %8 in 1 : vector<8x32xf32>, vector<8x32xf32> -> vector<8x64xf32>
    %cst_17 = arith.constant dense<0.000000e+00> : vector<8x128xf32>
    %35 = tpu.matmul %34, %4, %cst_17 {dimension_numbers = #tpu.dot_dimension_numbers<[1], [0], [0], [1], [0, 0, 1, 1], [], []>} : vector<8x64xf32>, vector<64x128xf32>, vector<8x128xf32> -> vector<8x128xf32>
    %36 = vector.broadcast %5 : vector<1x128xf32> to vector<8x128xf32>
    %37 = arith.addf %35, %36 : vector<8x128xf32>
    %38 = arith.negf %37 : vector<8x128xf32>
    %39 = math.exp %38 : vector<8x128xf32>
    %cst_18 = arith.constant 1.000000e+00 : f32
    %40 = vector.broadcast %cst_18 : f32 to vector<8x128xf32>
    %41 = arith.addf %40, %39 : vector<8x128xf32>
    %42 = arith.divf %40, %41 : vector<8x128xf32>
    %43 = math.tanh %37 : vector<8x128xf32>
    %44 = vector.extract_strided_slice %42 {offsets = [0, 0], sizes = [8, 32], strides = [1, 1]} : vector<8x128xf32> to vector<8x32xf32>
    %45 = vector.extract_strided_slice %42 {offsets = [0, 32], sizes = [8, 32], strides = [1, 1]} : vector<8x128xf32> to vector<8x32xf32>
    %46 = vector.extract_strided_slice %43 {offsets = [0, 64], sizes = [8, 32], strides = [1, 1]} : vector<8x128xf32> to vector<8x32xf32>
    %47 = vector.extract_strided_slice %42 {offsets = [0, 96], sizes = [8, 32], strides = [1, 1]} : vector<8x128xf32> to vector<8x32xf32>
    %48 = arith.mulf %45, %9 : vector<8x32xf32>
    %49 = arith.mulf %44, %46 : vector<8x32xf32>
    %50 = arith.addf %48, %49 : vector<8x32xf32>
    %51 = math.tanh %50 : vector<8x32xf32>
    %52 = arith.mulf %47, %51 : vector<8x32xf32>
    %c0_19 = arith.constant 0 : index
    %53 = memref.load %arg7[%c0_19] : memref<7xf32, #tpu.memory_space<smem>>
    %54 = vector.broadcast %53 : f32 to vector<8x32xf32>
    %55 = arith.mulf %54, %52 : vector<8x32xf32>
    %56 = arith.addf %10, %55 : vector<8x32xf32>
    %57 = vector.extract_strided_slice %0 {offsets = [0, 1], sizes = [8, 1], strides = [1, 1]} : vector<8x7xf32> to vector<8x1xf32>
    %58 = vector.broadcast %57 : vector<8x1xf32> to vector<8x128xf32>
    %59 = vector.broadcast %1 : vector<1x128xf32> to vector<8x128xf32>
    %60 = arith.mulf %58, %59 : vector<8x128xf32>
    %61 = vector.broadcast %3 : vector<1x128xf32> to vector<8x128xf32>
    %62 = arith.addf %60, %61 : vector<8x128xf32>
    %cst_20 = arith.constant dense<0.000000e+00> : vector<8x128xf32>
    %63 = tpu.matmul %33, %2, %cst_20 {dimension_numbers = #tpu.dot_dimension_numbers<[1], [0], [0], [1], [0, 0, 1, 1], [], []>} : vector<8x32xf32>, vector<32x128xf32>, vector<8x128xf32> -> vector<8x128xf32>
    %64 = arith.addf %62, %63 : vector<8x128xf32>
    %65 = arith.negf %64 : vector<8x128xf32>
    %66 = math.exp %65 : vector<8x128xf32>
    %cst_21 = arith.constant 1.000000e+00 : f32
    %67 = vector.broadcast %cst_21 : f32 to vector<8x128xf32>
    %68 = arith.addf %67, %66 : vector<8x128xf32>
    %69 = arith.divf %67, %68 : vector<8x128xf32>
    %70 = math.tanh %64 : vector<8x128xf32>
    %71 = vector.extract_strided_slice %69 {offsets = [0, 0], sizes = [8, 32], strides = [1, 1]} : vector<8x128xf32> to vector<8x32xf32>
    %72 = vector.extract_strided_slice %69 {offsets = [0, 32], sizes = [8, 32], strides = [1, 1]} : vector<8x128xf32> to vector<8x32xf32>
    %73 = vector.extract_strided_slice %70 {offsets = [0, 64], sizes = [8, 32], strides = [1, 1]} : vector<8x128xf32> to vector<8x32xf32>
    %74 = vector.extract_strided_slice %69 {offsets = [0, 96], sizes = [8, 32], strides = [1, 1]} : vector<8x128xf32> to vector<8x32xf32>
    %75 = arith.mulf %72, %31 : vector<8x32xf32>
    %76 = arith.mulf %71, %73 : vector<8x32xf32>
    %77 = arith.addf %75, %76 : vector<8x32xf32>
    %78 = math.tanh %77 : vector<8x32xf32>
    %79 = arith.mulf %74, %78 : vector<8x32xf32>
    %80 = tpu.concatenate %79, %52 in 1 : vector<8x32xf32>, vector<8x32xf32> -> vector<8x64xf32>
    %cst_22 = arith.constant dense<0.000000e+00> : vector<8x128xf32>
    %81 = tpu.matmul %80, %4, %cst_22 {dimension_numbers = #tpu.dot_dimension_numbers<[1], [0], [0], [1], [0, 0, 1, 1], [], []>} : vector<8x64xf32>, vector<64x128xf32>, vector<8x128xf32> -> vector<8x128xf32>
    %82 = vector.broadcast %5 : vector<1x128xf32> to vector<8x128xf32>
    %83 = arith.addf %81, %82 : vector<8x128xf32>
    %84 = arith.negf %83 : vector<8x128xf32>
    %85 = math.exp %84 : vector<8x128xf32>
    %cst_23 = arith.constant 1.000000e+00 : f32
    %86 = vector.broadcast %cst_23 : f32 to vector<8x128xf32>
    %87 = arith.addf %86, %85 : vector<8x128xf32>
    %88 = arith.divf %86, %87 : vector<8x128xf32>
    %89 = math.tanh %83 : vector<8x128xf32>
    %90 = vector.extract_strided_slice %88 {offsets = [0, 0], sizes = [8, 32], strides = [1, 1]} : vector<8x128xf32> to vector<8x32xf32>
    %91 = vector.extract_strided_slice %88 {offsets = [0, 32], sizes = [8, 32], strides = [1, 1]} : vector<8x128xf32> to vector<8x32xf32>
    %92 = vector.extract_strided_slice %89 {offsets = [0, 64], sizes = [8, 32], strides = [1, 1]} : vector<8x128xf32> to vector<8x32xf32>
    %93 = vector.extract_strided_slice %88 {offsets = [0, 96], sizes = [8, 32], strides = [1, 1]} : vector<8x128xf32> to vector<8x32xf32>
    %94 = arith.mulf %91, %50 : vector<8x32xf32>
    %95 = arith.mulf %90, %92 : vector<8x32xf32>
    %96 = arith.addf %94, %95 : vector<8x32xf32>
    %97 = math.tanh %96 : vector<8x32xf32>
    %98 = arith.mulf %93, %97 : vector<8x32xf32>
    %c1 = arith.constant 1 : index
    %99 = memref.load %arg7[%c1] : memref<7xf32, #tpu.memory_space<smem>>
    %100 = vector.broadcast %99 : f32 to vector<8x32xf32>
    %101 = arith.mulf %100, %98 : vector<8x32xf32>
    %102 = arith.addf %56, %101 : vector<8x32xf32>
    %103 = vector.extract_strided_slice %0 {offsets = [0, 2], sizes = [8, 1], strides = [1, 1]} : vector<8x7xf32> to vector<8x1xf32>
    %104 = vector.broadcast %103 : vector<8x1xf32> to vector<8x128xf32>
    %105 = vector.broadcast %1 : vector<1x128xf32> to vector<8x128xf32>
    %106 = arith.mulf %104, %105 : vector<8x128xf32>
    %107 = vector.broadcast %3 : vector<1x128xf32> to vector<8x128xf32>
    %108 = arith.addf %106, %107 : vector<8x128xf32>
    %cst_24 = arith.constant dense<0.000000e+00> : vector<8x128xf32>
    %109 = tpu.matmul %79, %2, %cst_24 {dimension_numbers = #tpu.dot_dimension_numbers<[1], [0], [0], [1], [0, 0, 1, 1], [], []>} : vector<8x32xf32>, vector<32x128xf32>, vector<8x128xf32> -> vector<8x128xf32>
    %110 = arith.addf %108, %109 : vector<8x128xf32>
    %111 = arith.negf %110 : vector<8x128xf32>
    %112 = math.exp %111 : vector<8x128xf32>
    %cst_25 = arith.constant 1.000000e+00 : f32
    %113 = vector.broadcast %cst_25 : f32 to vector<8x128xf32>
    %114 = arith.addf %113, %112 : vector<8x128xf32>
    %115 = arith.divf %113, %114 : vector<8x128xf32>
    %116 = math.tanh %110 : vector<8x128xf32>
    %117 = vector.extract_strided_slice %115 {offsets = [0, 0], sizes = [8, 32], strides = [1, 1]} : vector<8x128xf32> to vector<8x32xf32>
    %118 = vector.extract_strided_slice %115 {offsets = [0, 32], sizes = [8, 32], strides = [1, 1]} : vector<8x128xf32> to vector<8x32xf32>
    %119 = vector.extract_strided_slice %116 {offsets = [0, 64], sizes = [8, 32], strides = [1, 1]} : vector<8x128xf32> to vector<8x32xf32>
    %120 = vector.extract_strided_slice %115 {offsets = [0, 96], sizes = [8, 32], strides = [1, 1]} : vector<8x128xf32> to vector<8x32xf32>
    %121 = arith.mulf %118, %77 : vector<8x32xf32>
    %122 = arith.mulf %117, %119 : vector<8x32xf32>
    %123 = arith.addf %121, %122 : vector<8x32xf32>
    %124 = math.tanh %123 : vector<8x32xf32>
    %125 = arith.mulf %120, %124 : vector<8x32xf32>
    %126 = tpu.concatenate %125, %98 in 1 : vector<8x32xf32>, vector<8x32xf32> -> vector<8x64xf32>
    %cst_26 = arith.constant dense<0.000000e+00> : vector<8x128xf32>
    %127 = tpu.matmul %126, %4, %cst_26 {dimension_numbers = #tpu.dot_dimension_numbers<[1], [0], [0], [1], [0, 0, 1, 1], [], []>} : vector<8x64xf32>, vector<64x128xf32>, vector<8x128xf32> -> vector<8x128xf32>
    %128 = vector.broadcast %5 : vector<1x128xf32> to vector<8x128xf32>
    %129 = arith.addf %127, %128 : vector<8x128xf32>
    %130 = arith.negf %129 : vector<8x128xf32>
    %131 = math.exp %130 : vector<8x128xf32>
    %cst_27 = arith.constant 1.000000e+00 : f32
    %132 = vector.broadcast %cst_27 : f32 to vector<8x128xf32>
    %133 = arith.addf %132, %131 : vector<8x128xf32>
    %134 = arith.divf %132, %133 : vector<8x128xf32>
    %135 = math.tanh %129 : vector<8x128xf32>
    %136 = vector.extract_strided_slice %134 {offsets = [0, 0], sizes = [8, 32], strides = [1, 1]} : vector<8x128xf32> to vector<8x32xf32>
    %137 = vector.extract_strided_slice %134 {offsets = [0, 32], sizes = [8, 32], strides = [1, 1]} : vector<8x128xf32> to vector<8x32xf32>
    %138 = vector.extract_strided_slice %135 {offsets = [0, 64], sizes = [8, 32], strides = [1, 1]} : vector<8x128xf32> to vector<8x32xf32>
    %139 = vector.extract_strided_slice %134 {offsets = [0, 96], sizes = [8, 32], strides = [1, 1]} : vector<8x128xf32> to vector<8x32xf32>
    %140 = arith.mulf %137, %96 : vector<8x32xf32>
    %141 = arith.mulf %136, %138 : vector<8x32xf32>
    %142 = arith.addf %140, %141 : vector<8x32xf32>
    %143 = math.tanh %142 : vector<8x32xf32>
    %144 = arith.mulf %139, %143 : vector<8x32xf32>
    %c2 = arith.constant 2 : index
    %145 = memref.load %arg7[%c2] : memref<7xf32, #tpu.memory_space<smem>>
    %146 = vector.broadcast %145 : f32 to vector<8x32xf32>
    %147 = arith.mulf %146, %144 : vector<8x32xf32>
    %148 = arith.addf %102, %147 : vector<8x32xf32>
    %149 = vector.extract_strided_slice %0 {offsets = [0, 3], sizes = [8, 1], strides = [1, 1]} : vector<8x7xf32> to vector<8x1xf32>
    %150 = vector.broadcast %149 : vector<8x1xf32> to vector<8x128xf32>
    %151 = vector.broadcast %1 : vector<1x128xf32> to vector<8x128xf32>
    %152 = arith.mulf %150, %151 : vector<8x128xf32>
    %153 = vector.broadcast %3 : vector<1x128xf32> to vector<8x128xf32>
    %154 = arith.addf %152, %153 : vector<8x128xf32>
    %cst_28 = arith.constant dense<0.000000e+00> : vector<8x128xf32>
    %155 = tpu.matmul %125, %2, %cst_28 {dimension_numbers = #tpu.dot_dimension_numbers<[1], [0], [0], [1], [0, 0, 1, 1], [], []>} : vector<8x32xf32>, vector<32x128xf32>, vector<8x128xf32> -> vector<8x128xf32>
    %156 = arith.addf %154, %155 : vector<8x128xf32>
    %157 = arith.negf %156 : vector<8x128xf32>
    %158 = math.exp %157 : vector<8x128xf32>
    %cst_29 = arith.constant 1.000000e+00 : f32
    %159 = vector.broadcast %cst_29 : f32 to vector<8x128xf32>
    %160 = arith.addf %159, %158 : vector<8x128xf32>
    %161 = arith.divf %159, %160 : vector<8x128xf32>
    %162 = math.tanh %156 : vector<8x128xf32>
    %163 = vector.extract_strided_slice %161 {offsets = [0, 0], sizes = [8, 32], strides = [1, 1]} : vector<8x128xf32> to vector<8x32xf32>
    %164 = vector.extract_strided_slice %161 {offsets = [0, 32], sizes = [8, 32], strides = [1, 1]} : vector<8x128xf32> to vector<8x32xf32>
    %165 = vector.extract_strided_slice %162 {offsets = [0, 64], sizes = [8, 32], strides = [1, 1]} : vector<8x128xf32> to vector<8x32xf32>
    %166 = vector.extract_strided_slice %161 {offsets = [0, 96], sizes = [8, 32], strides = [1, 1]} : vector<8x128xf32> to vector<8x32xf32>
    %167 = arith.mulf %164, %123 : vector<8x32xf32>
    %168 = arith.mulf %163, %165 : vector<8x32xf32>
    %169 = arith.addf %167, %168 : vector<8x32xf32>
    %170 = math.tanh %169 : vector<8x32xf32>
    %171 = arith.mulf %166, %170 : vector<8x32xf32>
    %172 = tpu.concatenate %171, %144 in 1 : vector<8x32xf32>, vector<8x32xf32> -> vector<8x64xf32>
    %cst_30 = arith.constant dense<0.000000e+00> : vector<8x128xf32>
    %173 = tpu.matmul %172, %4, %cst_30 {dimension_numbers = #tpu.dot_dimension_numbers<[1], [0], [0], [1], [0, 0, 1, 1], [], []>} : vector<8x64xf32>, vector<64x128xf32>, vector<8x128xf32> -> vector<8x128xf32>
    %174 = vector.broadcast %5 : vector<1x128xf32> to vector<8x128xf32>
    %175 = arith.addf %173, %174 : vector<8x128xf32>
    %176 = arith.negf %175 : vector<8x128xf32>
    %177 = math.exp %176 : vector<8x128xf32>
    %cst_31 = arith.constant 1.000000e+00 : f32
    %178 = vector.broadcast %cst_31 : f32 to vector<8x128xf32>
    %179 = arith.addf %178, %177 : vector<8x128xf32>
    %180 = arith.divf %178, %179 : vector<8x128xf32>
    %181 = math.tanh %175 : vector<8x128xf32>
    %182 = vector.extract_strided_slice %180 {offsets = [0, 0], sizes = [8, 32], strides = [1, 1]} : vector<8x128xf32> to vector<8x32xf32>
    %183 = vector.extract_strided_slice %180 {offsets = [0, 32], sizes = [8, 32], strides = [1, 1]} : vector<8x128xf32> to vector<8x32xf32>
    %184 = vector.extract_strided_slice %181 {offsets = [0, 64], sizes = [8, 32], strides = [1, 1]} : vector<8x128xf32> to vector<8x32xf32>
    %185 = vector.extract_strided_slice %180 {offsets = [0, 96], sizes = [8, 32], strides = [1, 1]} : vector<8x128xf32> to vector<8x32xf32>
    %186 = arith.mulf %183, %142 : vector<8x32xf32>
    %187 = arith.mulf %182, %184 : vector<8x32xf32>
    %188 = arith.addf %186, %187 : vector<8x32xf32>
    %189 = math.tanh %188 : vector<8x32xf32>
    %190 = arith.mulf %185, %189 : vector<8x32xf32>
    %c3 = arith.constant 3 : index
    %191 = memref.load %arg7[%c3] : memref<7xf32, #tpu.memory_space<smem>>
    %192 = vector.broadcast %191 : f32 to vector<8x32xf32>
    %193 = arith.mulf %192, %190 : vector<8x32xf32>
    %194 = arith.addf %148, %193 : vector<8x32xf32>
    %195 = vector.extract_strided_slice %0 {offsets = [0, 4], sizes = [8, 1], strides = [1, 1]} : vector<8x7xf32> to vector<8x1xf32>
    %196 = vector.broadcast %195 : vector<8x1xf32> to vector<8x128xf32>
    %197 = vector.broadcast %1 : vector<1x128xf32> to vector<8x128xf32>
    %198 = arith.mulf %196, %197 : vector<8x128xf32>
    %199 = vector.broadcast %3 : vector<1x128xf32> to vector<8x128xf32>
    %200 = arith.addf %198, %199 : vector<8x128xf32>
    %cst_32 = arith.constant dense<0.000000e+00> : vector<8x128xf32>
    %201 = tpu.matmul %171, %2, %cst_32 {dimension_numbers = #tpu.dot_dimension_numbers<[1], [0], [0], [1], [0, 0, 1, 1], [], []>} : vector<8x32xf32>, vector<32x128xf32>, vector<8x128xf32> -> vector<8x128xf32>
    %202 = arith.addf %200, %201 : vector<8x128xf32>
    %203 = arith.negf %202 : vector<8x128xf32>
    %204 = math.exp %203 : vector<8x128xf32>
    %cst_33 = arith.constant 1.000000e+00 : f32
    %205 = vector.broadcast %cst_33 : f32 to vector<8x128xf32>
    %206 = arith.addf %205, %204 : vector<8x128xf32>
    %207 = arith.divf %205, %206 : vector<8x128xf32>
    %208 = math.tanh %202 : vector<8x128xf32>
    %209 = vector.extract_strided_slice %207 {offsets = [0, 0], sizes = [8, 32], strides = [1, 1]} : vector<8x128xf32> to vector<8x32xf32>
    %210 = vector.extract_strided_slice %207 {offsets = [0, 32], sizes = [8, 32], strides = [1, 1]} : vector<8x128xf32> to vector<8x32xf32>
    %211 = vector.extract_strided_slice %208 {offsets = [0, 64], sizes = [8, 32], strides = [1, 1]} : vector<8x128xf32> to vector<8x32xf32>
    %212 = vector.extract_strided_slice %207 {offsets = [0, 96], sizes = [8, 32], strides = [1, 1]} : vector<8x128xf32> to vector<8x32xf32>
    %213 = arith.mulf %210, %169 : vector<8x32xf32>
    %214 = arith.mulf %209, %211 : vector<8x32xf32>
    %215 = arith.addf %213, %214 : vector<8x32xf32>
    %216 = math.tanh %215 : vector<8x32xf32>
    %217 = arith.mulf %212, %216 : vector<8x32xf32>
    %218 = tpu.concatenate %217, %190 in 1 : vector<8x32xf32>, vector<8x32xf32> -> vector<8x64xf32>
    %cst_34 = arith.constant dense<0.000000e+00> : vector<8x128xf32>
    %219 = tpu.matmul %218, %4, %cst_34 {dimension_numbers = #tpu.dot_dimension_numbers<[1], [0], [0], [1], [0, 0, 1, 1], [], []>} : vector<8x64xf32>, vector<64x128xf32>, vector<8x128xf32> -> vector<8x128xf32>
    %220 = vector.broadcast %5 : vector<1x128xf32> to vector<8x128xf32>
    %221 = arith.addf %219, %220 : vector<8x128xf32>
    %222 = arith.negf %221 : vector<8x128xf32>
    %223 = math.exp %222 : vector<8x128xf32>
    %cst_35 = arith.constant 1.000000e+00 : f32
    %224 = vector.broadcast %cst_35 : f32 to vector<8x128xf32>
    %225 = arith.addf %224, %223 : vector<8x128xf32>
    %226 = arith.divf %224, %225 : vector<8x128xf32>
    %227 = math.tanh %221 : vector<8x128xf32>
    %228 = vector.extract_strided_slice %226 {offsets = [0, 0], sizes = [8, 32], strides = [1, 1]} : vector<8x128xf32> to vector<8x32xf32>
    %229 = vector.extract_strided_slice %226 {offsets = [0, 32], sizes = [8, 32], strides = [1, 1]} : vector<8x128xf32> to vector<8x32xf32>
    %230 = vector.extract_strided_slice %227 {offsets = [0, 64], sizes = [8, 32], strides = [1, 1]} : vector<8x128xf32> to vector<8x32xf32>
    %231 = vector.extract_strided_slice %226 {offsets = [0, 96], sizes = [8, 32], strides = [1, 1]} : vector<8x128xf32> to vector<8x32xf32>
    %232 = arith.mulf %229, %188 : vector<8x32xf32>
    %233 = arith.mulf %228, %230 : vector<8x32xf32>
    %234 = arith.addf %232, %233 : vector<8x32xf32>
    %235 = math.tanh %234 : vector<8x32xf32>
    %236 = arith.mulf %231, %235 : vector<8x32xf32>
    %c4 = arith.constant 4 : index
    %237 = memref.load %arg7[%c4] : memref<7xf32, #tpu.memory_space<smem>>
    %238 = vector.broadcast %237 : f32 to vector<8x32xf32>
    %239 = arith.mulf %238, %236 : vector<8x32xf32>
    %240 = arith.addf %194, %239 : vector<8x32xf32>
    %241 = vector.extract_strided_slice %0 {offsets = [0, 5], sizes = [8, 1], strides = [1, 1]} : vector<8x7xf32> to vector<8x1xf32>
    %242 = vector.broadcast %241 : vector<8x1xf32> to vector<8x128xf32>
    %243 = vector.broadcast %1 : vector<1x128xf32> to vector<8x128xf32>
    %244 = arith.mulf %242, %243 : vector<8x128xf32>
    %245 = vector.broadcast %3 : vector<1x128xf32> to vector<8x128xf32>
    %246 = arith.addf %244, %245 : vector<8x128xf32>
    %cst_36 = arith.constant dense<0.000000e+00> : vector<8x128xf32>
    %247 = tpu.matmul %217, %2, %cst_36 {dimension_numbers = #tpu.dot_dimension_numbers<[1], [0], [0], [1], [0, 0, 1, 1], [], []>} : vector<8x32xf32>, vector<32x128xf32>, vector<8x128xf32> -> vector<8x128xf32>
    %248 = arith.addf %246, %247 : vector<8x128xf32>
    %249 = arith.negf %248 : vector<8x128xf32>
    %250 = math.exp %249 : vector<8x128xf32>
    %cst_37 = arith.constant 1.000000e+00 : f32
    %251 = vector.broadcast %cst_37 : f32 to vector<8x128xf32>
    %252 = arith.addf %251, %250 : vector<8x128xf32>
    %253 = arith.divf %251, %252 : vector<8x128xf32>
    %254 = math.tanh %248 : vector<8x128xf32>
    %255 = vector.extract_strided_slice %253 {offsets = [0, 0], sizes = [8, 32], strides = [1, 1]} : vector<8x128xf32> to vector<8x32xf32>
    %256 = vector.extract_strided_slice %253 {offsets = [0, 32], sizes = [8, 32], strides = [1, 1]} : vector<8x128xf32> to vector<8x32xf32>
    %257 = vector.extract_strided_slice %254 {offsets = [0, 64], sizes = [8, 32], strides = [1, 1]} : vector<8x128xf32> to vector<8x32xf32>
    %258 = vector.extract_strided_slice %253 {offsets = [0, 96], sizes = [8, 32], strides = [1, 1]} : vector<8x128xf32> to vector<8x32xf32>
    %259 = arith.mulf %256, %215 : vector<8x32xf32>
    %260 = arith.mulf %255, %257 : vector<8x32xf32>
    %261 = arith.addf %259, %260 : vector<8x32xf32>
    %262 = math.tanh %261 : vector<8x32xf32>
    %263 = arith.mulf %258, %262 : vector<8x32xf32>
    %264 = tpu.concatenate %263, %236 in 1 : vector<8x32xf32>, vector<8x32xf32> -> vector<8x64xf32>
    %cst_38 = arith.constant dense<0.000000e+00> : vector<8x128xf32>
    %265 = tpu.matmul %264, %4, %cst_38 {dimension_numbers = #tpu.dot_dimension_numbers<[1], [0], [0], [1], [0, 0, 1, 1], [], []>} : vector<8x64xf32>, vector<64x128xf32>, vector<8x128xf32> -> vector<8x128xf32>
    %266 = vector.broadcast %5 : vector<1x128xf32> to vector<8x128xf32>
    %267 = arith.addf %265, %266 : vector<8x128xf32>
    %268 = arith.negf %267 : vector<8x128xf32>
    %269 = math.exp %268 : vector<8x128xf32>
    %cst_39 = arith.constant 1.000000e+00 : f32
    %270 = vector.broadcast %cst_39 : f32 to vector<8x128xf32>
    %271 = arith.addf %270, %269 : vector<8x128xf32>
    %272 = arith.divf %270, %271 : vector<8x128xf32>
    %273 = math.tanh %267 : vector<8x128xf32>
    %274 = vector.extract_strided_slice %272 {offsets = [0, 0], sizes = [8, 32], strides = [1, 1]} : vector<8x128xf32> to vector<8x32xf32>
    %275 = vector.extract_strided_slice %272 {offsets = [0, 32], sizes = [8, 32], strides = [1, 1]} : vector<8x128xf32> to vector<8x32xf32>
    %276 = vector.extract_strided_slice %273 {offsets = [0, 64], sizes = [8, 32], strides = [1, 1]} : vector<8x128xf32> to vector<8x32xf32>
    %277 = vector.extract_strided_slice %272 {offsets = [0, 96], sizes = [8, 32], strides = [1, 1]} : vector<8x128xf32> to vector<8x32xf32>
    %278 = arith.mulf %275, %234 : vector<8x32xf32>
    %279 = arith.mulf %274, %276 : vector<8x32xf32>
    %280 = arith.addf %278, %279 : vector<8x32xf32>
    %281 = math.tanh %280 : vector<8x32xf32>
    %282 = arith.mulf %277, %281 : vector<8x32xf32>
    %c5 = arith.constant 5 : index
    %283 = memref.load %arg7[%c5] : memref<7xf32, #tpu.memory_space<smem>>
    %284 = vector.broadcast %283 : f32 to vector<8x32xf32>
    %285 = arith.mulf %284, %282 : vector<8x32xf32>
    %286 = arith.addf %240, %285 : vector<8x32xf32>
    %287 = vector.extract_strided_slice %0 {offsets = [0, 6], sizes = [8, 1], strides = [1, 1]} : vector<8x7xf32> to vector<8x1xf32>
    %288 = vector.broadcast %287 : vector<8x1xf32> to vector<8x128xf32>
    %289 = vector.broadcast %1 : vector<1x128xf32> to vector<8x128xf32>
    %290 = arith.mulf %288, %289 : vector<8x128xf32>
    %291 = vector.broadcast %3 : vector<1x128xf32> to vector<8x128xf32>
    %292 = arith.addf %290, %291 : vector<8x128xf32>
    %cst_40 = arith.constant dense<0.000000e+00> : vector<8x128xf32>
    %293 = tpu.matmul %263, %2, %cst_40 {dimension_numbers = #tpu.dot_dimension_numbers<[1], [0], [0], [1], [0, 0, 1, 1], [], []>} : vector<8x32xf32>, vector<32x128xf32>, vector<8x128xf32> -> vector<8x128xf32>
    %294 = arith.addf %292, %293 : vector<8x128xf32>
    %295 = arith.negf %294 : vector<8x128xf32>
    %296 = math.exp %295 : vector<8x128xf32>
    %cst_41 = arith.constant 1.000000e+00 : f32
    %297 = vector.broadcast %cst_41 : f32 to vector<8x128xf32>
    %298 = arith.addf %297, %296 : vector<8x128xf32>
    %299 = arith.divf %297, %298 : vector<8x128xf32>
    %300 = math.tanh %294 : vector<8x128xf32>
    %301 = vector.extract_strided_slice %299 {offsets = [0, 0], sizes = [8, 32], strides = [1, 1]} : vector<8x128xf32> to vector<8x32xf32>
    %302 = vector.extract_strided_slice %299 {offsets = [0, 32], sizes = [8, 32], strides = [1, 1]} : vector<8x128xf32> to vector<8x32xf32>
    %303 = vector.extract_strided_slice %300 {offsets = [0, 64], sizes = [8, 32], strides = [1, 1]} : vector<8x128xf32> to vector<8x32xf32>
    %304 = vector.extract_strided_slice %299 {offsets = [0, 96], sizes = [8, 32], strides = [1, 1]} : vector<8x128xf32> to vector<8x32xf32>
    %305 = arith.mulf %302, %261 : vector<8x32xf32>
    %306 = arith.mulf %301, %303 : vector<8x32xf32>
    %307 = arith.addf %305, %306 : vector<8x32xf32>
    %308 = math.tanh %307 : vector<8x32xf32>
    %309 = arith.mulf %304, %308 : vector<8x32xf32>
    %310 = tpu.concatenate %309, %282 in 1 : vector<8x32xf32>, vector<8x32xf32> -> vector<8x64xf32>
    %cst_42 = arith.constant dense<0.000000e+00> : vector<8x128xf32>
    %311 = tpu.matmul %310, %4, %cst_42 {dimension_numbers = #tpu.dot_dimension_numbers<[1], [0], [0], [1], [0, 0, 1, 1], [], []>} : vector<8x64xf32>, vector<64x128xf32>, vector<8x128xf32> -> vector<8x128xf32>
    %312 = vector.broadcast %5 : vector<1x128xf32> to vector<8x128xf32>
    %313 = arith.addf %311, %312 : vector<8x128xf32>
    %314 = arith.negf %313 : vector<8x128xf32>
    %315 = math.exp %314 : vector<8x128xf32>
    %cst_43 = arith.constant 1.000000e+00 : f32
    %316 = vector.broadcast %cst_43 : f32 to vector<8x128xf32>
    %317 = arith.addf %316, %315 : vector<8x128xf32>
    %318 = arith.divf %316, %317 : vector<8x128xf32>
    %319 = math.tanh %313 : vector<8x128xf32>
    %320 = vector.extract_strided_slice %318 {offsets = [0, 0], sizes = [8, 32], strides = [1, 1]} : vector<8x128xf32> to vector<8x32xf32>
    %321 = vector.extract_strided_slice %318 {offsets = [0, 32], sizes = [8, 32], strides = [1, 1]} : vector<8x128xf32> to vector<8x32xf32>
    %322 = vector.extract_strided_slice %319 {offsets = [0, 64], sizes = [8, 32], strides = [1, 1]} : vector<8x128xf32> to vector<8x32xf32>
    %323 = vector.extract_strided_slice %318 {offsets = [0, 96], sizes = [8, 32], strides = [1, 1]} : vector<8x128xf32> to vector<8x32xf32>
    %324 = arith.mulf %321, %280 : vector<8x32xf32>
    %325 = arith.mulf %320, %322 : vector<8x32xf32>
    %326 = arith.addf %324, %325 : vector<8x32xf32>
    %327 = math.tanh %326 : vector<8x32xf32>
    %328 = arith.mulf %323, %327 : vector<8x32xf32>
    %c6 = arith.constant 6 : index
    %329 = memref.load %arg7[%c6] : memref<7xf32, #tpu.memory_space<smem>>
    %330 = vector.broadcast %329 : f32 to vector<8x32xf32>
    %331 = arith.mulf %330, %328 : vector<8x32xf32>
    %332 = arith.addf %286, %331 : vector<8x32xf32>
    %c0_44 = arith.constant 0 : index
    %c0_45 = arith.constant 0 : index
    %333 = vector.load %arg6[%c0_44, %c0_45] : memref<32x1xf32, #tpu.memory_space<vmem>>, vector<32x1xf32>
    %cst_46 = arith.constant dense<0.000000e+00> : vector<8x1xf32>
    %334 = tpu.matmul %332, %333, %cst_46 {dimension_numbers = #tpu.dot_dimension_numbers<[1], [0], [0], [1], [0, 0, 1, 1], [], []>} : vector<8x32xf32>, vector<32x1xf32>, vector<8x1xf32> -> vector<8x1xf32>
    %c0_47 = arith.constant 0 : index
    %335 = memref.load %arg8[%c0_47] : memref<1xf32, #tpu.memory_space<smem>>
    %336 = vector.broadcast %335 : f32 to vector<8x1xf32>
    %337 = arith.addf %334, %336 : vector<8x1xf32>
    %c0_48 = arith.constant 0 : index
    %c0_49 = arith.constant 0 : index
    %338 = vector.load %arg9[%c0_48, %c0_49] : memref<8x1xf32, #tpu.memory_space<vmem>>, vector<8x1xf32>
    tpu.vector_store %arg9[%c0_48, %c0_49], %337 {strides = array<i32>} : memref<8x1xf32, #tpu.memory_space<vmem>>, vector<8x1xf32>,
    return
  }
}

</mosaic_0001>

<bundles_post_ra>
// kernel: tpu_custom_call.1
= control target key start
LH: loop header
LB: loop body
LE: loop exit
PB: predicated region body
PF: predicated region fallthrough
CT: control target
= control target key end

     0   :  { %15 = vsyncpa [#allocation4], 0  ;;  %s2761_s0 = inlined_call_operand.hbm [shape: f32[8,7], index: 0, kind: input, shape index: {}]   ;;  %s2762_s1 = inlined_call_operand.vmem [shape: f32[1,128], index: 1, kind: input, shape index: {}]   ;;  %s2763_s2 = inlined_call_operand.vmem [shape: f32[32,128], index: 2, kind: input, shape index: {}]   ;;  %s2764_s3 = inlined_call_operand.vmem [shape: f32[1,128], index: 3, kind: input, shape index: {}]   ;;  %s2765_s4 = inlined_call_operand.hbm [shape: f32[64,128], index: 4, kind: input, shape index: {}]   ;;  %s2766_s5 = inlined_call_operand.vmem [shape: f32[1,128], index: 5, kind: input, shape index: {}]   ;;  %s2767_s6 = inlined_call_operand.vmem [shape: f32[32,1], index: 6, kind: input, shape index: {}]   ;;  %s2768_s7 = inlined_call_operand.vmem [shape: f32[7], index: 7, kind: input, shape index: {}]   ;;  %s2769_s8 = inlined_call_operand.<no memory space> [shape: f32[1], index: 8, kind: input, shape index: {}]   ;;  %s2770_s9 = inlined_call_operand.vmem [shape: f32[8,1], index: 9, kind: output, shape index: {}]  }
   0x1   :  { %16 = vsyncpa [#allocation7], 0 }
   0x2   :  { %17 = vsyncpa [#allocation5], 0  ;;  %s2244_s30 = smov [#allocation3]   ;;  %s2245_s11 = smov [#allocation6]  }
   0x3   :  { %s24_s10 = sshll.u32 %s2244_s30, 4  ;;  %s39_s12 = sshll.u32 %s2245_s11, 4  ;;  %s25_s10 = int_to_ptr.vmem [resolvable:$true] %s24_s10  ;;  %s40_s12 = int_to_ptr.vmem [resolvable:$true] %s39_s12 }
   0x4   :  { %s2194_s13 = scalar_lea.vmem %s25_s10, 128  ;;  %p2199_p1 = scmp.lt.s32.totalorder %s25_s10, %s25_s10 }
   0x5   :  { %p2195_p0 = scmp.ne.s32.totalorder %s25_s10, %s2194_s13  ;;  %p2200_p2 = scmp.lt.s32.totalorder %s2194_s13, %s2194_s13 }
   0x7   :  { %p2201_p3 = por %p2200_p2, %p2199_p1 }
   0x9   :  { %p2202_p4 = pnand %p2201_p3, %p2195_p0 }
   0xb   :  { %2205 = shalt.err (!%p2202_p4)
}
   0xc   :  { %27 = dma.hbm_to_vmem [thread:$0]  %s2761_s0, 128, %s25_s10, [#allocation4]  }
   0xd   :  { %s2214_s16 = scalar_lea.vmem %s40_s12, 1024  ;;  %p2219_p6 = scmp.lt.s32.totalorder %s40_s12, %s40_s12 }
   0xe   :  { %p2215_p5 = scmp.ne.s32.totalorder %s40_s12, %s2214_s16  ;;  %p2220_p7 = scmp.lt.s32.totalorder %s2214_s16, %s2214_s16 }
  0x10   :  { %p2221_p8 = por %p2220_p7, %p2219_p6 }
  0x12   :  { %p2222_p9 = pnand %p2221_p8, %p2215_p5 }
  0x14   :  { %2225 = shalt.err (!%p2222_p9)
}
  0x15   :  { %s2246_s17 = smov 128   ;;  %s2247_s18 = smov 8  }
  0x16   :  { %45 = dma.hbm_to_vmem [thread:$0]  %s2765_s4, 1024, %s40_s12, [#allocation7], %s2246_s17, %s2246_s17, %s2247_s18  }
  0x17   :  { %s56_s23 = sshll.u32 %s2768_s7, 4  ;;  %s57_s23 = int_to_ptr.vmem [resolvable:$true] %s56_s23 }
  0x18   :  { %s2226_s24 = scalar_lea.vmem %s57_s23, 16  ;;  %p2231_p11 = scmp.lt.s32.totalorder %s57_s23, %s57_s23 }
  0x19   :  { %p2227_p10 = scmp.ne.s32.totalorder %s57_s23, %s2226_s24  ;;  %p2232_p12 = scmp.lt.s32.totalorder %s2226_s24, %s2226_s24 }
  0x1b   :  { %p2233_p13 = por %p2232_p12, %p2231_p11 }
  0x1d   :  { %p2234_p0 = pnand %p2233_p13, %p2227_p10 }
  0x1f   :  { %2237 = shalt.err (!%p2234_p0)
}
  0x20   :  { %s2248_s0 = smov [#allocation8]  }
  0x21   :  { %59 = dma.vmem_to_smem %s57_s23, 16, %s2248_s0, [#allocation5]  }
  0x22   :  { %2238 = dma.done.wait [#allocation4], 128  }
  0x23   :  { %2239 = vsyncadd [#allocation4], 4294967168 }
  0x24   :  { %2240 = dma.done.wait [#allocation7], 1024  }
  0x25   :  { %2241 = vsyncadd [#allocation7], 4294966272 }
  0x26   :  { %2242 = dma.done.wait [#allocation5], 16  }
  0x27   :  { %2243 = vsyncadd [#allocation5], 4294967280 }
  0x28   :  { %71 = sfence }
  0x29   :  { %v2322_v0 = vld [vmem:[%s2763_s2 + $0x18] sm:$0xff]  ;;  %v2249_v1 = vmov 0.0   ;;  %v2328_v2 = vld [vmem:[%s2763_s2 + $0x10] sm:$0xff]  ;;  %vm2250_vm0 = vmmov 0   ;;  %v2332_v3 = vld [vmem:[#allocation3] sm:$0xff]  ;;  %v2251_v4 = vmov 0  }
  0x2a   :  { %1827 = vmatprep.subr.mxu0 %v2249_v1  ;;  %1835 = vmatprep.mubr.msk.f32.mxu0 %vm2250_vm0, %v2249_v1  ;;  %v2339_v5 = vld [vmem:[%s2763_s2 + $0x8] sm:$0xff]  ;;  %v2348_v6 = vld [vmem:[%s2763_s2] sm:$0xff]  ;;  %s2252_s13 = smov 64   ;;  %s2253_s14 = smov 32   ;;  %v2386_v26 = vld [vmem:[#allocation6 + $0x30] sm:$0xff]  ;;  %v2254_v34 = vmov 1  }
  0x2b   :  { %1828 = vmatpush3.msra.mxu0 %v2322_v0  ;;  %2064 = vset.pattern.permute.xlu0 %v2251_v4  ;;  %v2370_v7 = vld [vmem:[%s2762_s1] ss:$0 sm:$0xff]  ;;  %v2390_v27 = vld [vmem:[#allocation6 + $0x28] sm:$0xff]  ;;  %v2394_v28 = vld [vmem:[#allocation6 + $0x20] sm:$0xff]  ;;  %vm107_vm1 = vcmask 261120   ;;  %vm217_vm2 = vcmask 523264  }
  0x2c   :  { %1829 = vmatprep.subr.mxu0 %v2249_v1  ;;  %90 = vperm.xlu0 %2064, %v2332_v3   ;;  %v2376_v10 = vld [vmem:[%s2764_s3] ss:$0 sm:$0xff]  ;;  %v2402_v30 = vld [vmem:[#allocation6 + $0x10] sm:$0xff]  ;;  %v2406_v32 = vld [vmem:[#allocation6 + $0x8] sm:$0xff]  ;;  %s1697_s17 = sld [smem:[#allocation8 + $0x1]]  ;;  %vm1678_vm3 = vcmask 7168  }
  0x2d   :  { %1830 = vmatpush3.msra.mxu0 %v2328_v2  ;;  %1838 = vmatprep.subr.mxu1 %v2249_v1  ;;  %v2384_v25 = vld [vmem:[#allocation6 + $0x38] sm:$0xff]  ;;  %v2413_v33 = vld [vmem:[#allocation6] sm:$0xff]  ;;  %s1702_s18 = sld [smem:[#allocation8 + $0x2]] }
  0x2e   :  { %1831 = vmatprep.subr.mxu0 %v2249_v1  ;;  %1854 = vmatprep.mubr.msk.f32.mxu1 %vm2250_vm0, %v2249_v1  ;;  %v2398_v29 = vld [vmem:[#allocation6 + $0x18] sm:$0xff]  ;;  %s1707_s19 = sld [smem:[#allocation8 + $0x3]] }
  0x2f   :  { %1832 = vmatpush3.msra.mxu0 %v2339_v5  ;;  %1839 = vmatpush3.msra.mxu1 %v2384_v25  ;;  %v2455_v42 = vld [vmem:[%s2766_s5] ss:$0 sm:$0xff]  ;;  %s315_s5 = sld [smem:[#allocation8]] }
  0x30   :  { %1833 = vmatprep.subr.mxu0 %v2249_v1  ;;  %1840 = vmatprep.subr.mxu1 %v2249_v1  ;;  %s1712_s20 = sld [smem:[#allocation8 + $0x4]] }
  0x31   :  { %1834 = vmatpush3.msra.mxu0 %v2348_v6  ;;  %1841 = vmatpush3.msra.mxu1 %v2386_v26  ;;  %s1722_s29 = sld [smem:[#allocation8 + $0x6]] }
  0x32   :  { %1836 = vmatmul.mubr.f32.vlgmr.msra.gmra.mxu0 %v2249_v1  ;;  %1857 = vmatprep.subr.mxu0 %v2249_v1 }
  0x33   :  { %1858 = vmatpush3.msra.mxu0 %v2322_v0  ;;  %1865 = vmatprep.mubr.msk.f32.mxu0 %vm2250_vm0, %v2249_v1 }
  0x34   :  { %1859 = vmatprep.subr.mxu0 %v2249_v1  ;;  %1842 = vmatprep.subr.mxu1 %v2249_v1 }
  0x35   :  { %1860 = vmatpush3.msra.mxu0 %v2328_v2  ;;  %1843 = vmatpush3.msra.mxu1 %v2390_v27 }
  0x36   :  { %1861 = vmatprep.subr.mxu0 %v2249_v1  ;;  %1844 = vmatprep.subr.mxu1 %v2249_v1 }
  0x37   :  { %1862 = vmatpush3.msra.mxu0 %v2339_v5  ;;  %1845 = vmatpush3.msra.mxu1 %v2394_v28 }
  0x38   :  { %1863 = vmatprep.subr.mxu0 %v2249_v1  ;;  %1846 = vmatprep.subr.mxu1 %v2249_v1 }
  0x39   :  { %1864 = vmatpush3.msra.mxu0 %v2348_v6  ;;  %1847 = vmatpush3.msra.mxu1 %v2398_v29 }
  0x3a   :  { %1868 = vmatprep.subr.mxu0 %v2249_v1  ;;  %1848 = vmatprep.subr.mxu1 %v2249_v1 }
  0x3b   :  { %1849 = vmatpush3.msra.mxu1 %v2402_v30  ;;  %2065 = vset.pattern.permute.xlu1 %v2254_v34 }
  0x3c   :  { %1850 = vmatprep.subr.mxu1 %v2249_v1 }
  0x3d   :  { %1851 = vmatpush3.msra.mxu1 %v2406_v32 }
  0x3e   :  { %1852 = vmatprep.subr.mxu1 %v2249_v1 }
  0x3f   :  { %1853 = vmatpush3.msra.mxu1 %v2413_v33 }
  0x40   :  { %1887 = vmatprep.subr.mxu1 %v2249_v1 }
  0xa7   :  { %v91_v8 = vpop.permute.xlu0 %90 }
  0xa8   :  { %v99_v9 = vmul.f32 %v2370_v7, %v91_v8 }
  0xaa   :  { %v106_v11 = vadd.f32 %v2376_v10, %v99_v9 }
  0xf2   :  { %v177_v12 = vpop.f32.mrf.mxu0 }
  0xf3   :  { %v181_v13 = vadd.f32 %v177_v12, %v106_v11 }
  0xf4   :  { %v1837_v14 = vpop.f32.mrf.mxu0 }
  0xf5   :  { %2071 = vtanh.f32 %v181_v13  ;;  %v1689_v16 = vmul.f32 -1.442695, %v181_v13 }
  0xf7   :  { %2073 = vpow2.f32 %v1689_v16 }
 0x102   :  { %v2072_v15 = vpop.eup %2071 }
 0x103   :  { %191 = vrot.lane.b32.xlu0 %v2072_v15, %s2252_s13  ;;  %v2255_v15 = vmov 2  }
 0x104   :  { %v2074_v17 = vpop.eup %2073  ;;  %2066 = vset.pattern.permute.xlu0 %v2255_v15 }
 0x105   :  { %v185_v18 = vadd.f32 1.0, %v2074_v17 }
 0x107   :  { %2075 = vrcp.f32 %v185_v18 }
 0x114   :  { %v2076_v19 = vpop.eup %2075 }
 0x115   :  { %v189_v22 = vmul.f32 0.0, %v2076_v19 }
 0x175   :  { %v192_v20 = vpop.permute.xlu0 %191 }
 0x176   :  { %v194_v21 = vmul.f32 %v2076_v19, %v192_v20 }
 0x178   :  { %196 = vrot.lane.b32.xlu1 %v194_v21, %s2253_s14 }
 0x1ea   :  { %v197_v23 = vpop.permute.xlu1 %196 }
 0x1eb   :  { %v2381_v24 = vadd.f32 %v197_v23, %v189_v22 }
 0x1ed   :  { %2077 = vtanh.f32 %v2381_v24 }
 0x1fa   :  { %v2078_v31 = vpop.eup %2077 }
 0x1fb   :  { %202 = vrot.lane.b32.xlu1 %v2078_v31, %s2252_s13 }
 0x1ff   :  { %320 = vperm.xlu1 %2065, %v2332_v3  }
 0x26d   :  { %v203_v35 = vpop.permute.xlu1 %202 }
 0x26e   :  { %v205_v36 = vmul.f32 %v2076_v19, %v203_v35 }
 0x270   :  { %207 = vrot.lane.b32.xlu0 %v205_v36, %s2253_s14 }
 0x27a   :  { %v321_v39 = vpop.permute.xlu1 %320 }
 0x27b   :  { %v323_v40 = vmul.f32 %v2370_v7, %v321_v39 }
 0x27d   :  { %v324_v41 = vadd.f32 %v2376_v10, %v323_v40 }
 0x2e2   :  { %v208_v37 = vpop.permute.xlu0 %207 }
 0x2e3   :  { %v210_v38 = vsel %vm107_vm1, %v208_v37, 0.0  ;;  %1866 = vmatmul.mubr.msk.f32.vlgmr.msra.gmra.mxu0 %vm107_vm1, %v208_v37 }
 0x2e4   :  { %1855 = vmatmul.mubr.msk.f32.vlgmr.msra.gmra.mxu1 %vm217_vm2, %v210_v38  ;;  %1869 = vmatpush3.msra.mxu0 %v2384_v25 }
 0x2e5   :  { %1870 = vmatprep.subr.mxu0 %v2249_v1  ;;  %1888 = vmatpush3.msra.mxu1 %v2322_v0 }
 0x2e6   :  { %1871 = vmatpush3.msra.mxu0 %v2386_v26  ;;  %1889 = vmatprep.subr.mxu1 %v2249_v1 }
 0x2e7   :  { %1872 = vmatprep.subr.mxu0 %v2249_v1  ;;  %1890 = vmatpush3.msra.mxu1 %v2328_v2 }
 0x2e8   :  { %1873 = vmatpush3.msra.mxu0 %v2390_v27  ;;  %1891 = vmatprep.subr.mxu1 %v2249_v1 }
 0x2e9   :  { %1874 = vmatprep.subr.mxu0 %v2249_v1  ;;  %1892 = vmatpush3.msra.mxu1 %v2339_v5 }
 0x2ea   :  { %1875 = vmatpush3.msra.mxu0 %v2394_v28  ;;  %1893 = vmatprep.subr.mxu1 %v2249_v1 }
 0x2eb   :  { %1876 = vmatprep.subr.mxu0 %v2249_v1  ;;  %1894 = vmatpush3.msra.mxu1 %v2348_v6 }
 0x2ec   :  { %1877 = vmatpush3.msra.mxu0 %v2398_v29  ;;  %1895 = vmatprep.mubr.msk.f32.mxu1 %vm2250_vm0, %v2249_v1 }
 0x2ed   :  { %1878 = vmatprep.subr.mxu0 %v2249_v1  ;;  %1884 = vmatprep.mubr.msk.f32.mxu0 %vm2250_vm0, %v2249_v1 }
 0x2ee   :  { %1879 = vmatpush3.msra.mxu0 %v2402_v30  ;;  %1898 = vmatprep.subr.mxu1 %v2249_v1 }
 0x2ef   :  { %1880 = vmatprep.subr.mxu0 %v2249_v1 }
 0x2f0   :  { %1881 = vmatpush3.msra.mxu0 %v2406_v32 }
 0x2f1   :  { %1882 = vmatprep.subr.mxu0 %v2249_v1 }
 0x2f2   :  { %1883 = vmatpush3.msra.mxu0 %v2413_v33 }
 0x2f3   :  { %1917 = vmatprep.subr.mxu0 %v2249_v1 }
 0x3a3   :  { %v393_v43 = vpop.f32.mrf.mxu0 }
 0x3a4   :  { %v397_v44 = vadd.f32 %v393_v43, %v324_v41  ;;  %v287_v45 = vpop.f32.mrf.mxu1 }
 0x3a5   :  { %v288_v46 = vadd.f32 %v2455_v42, %v287_v45  ;;  %v1867_v47 = vpop.f32.mrf.mxu0 }
 0x3a6   :  { %2079 = vtanh.f32 %v397_v44  ;;  %v1856_v48 = vpop.f32.mrf.mxu1  ;;  %v1694_v51 = vmul.f32 -1.442695, %v397_v44 }
 0x3a7   :  { %2081 = vtanh.f32 %v288_v46  ;;  %v1692_v52 = vmul.f32 -1.442695, %v288_v46 }
 0x3a8   :  { %2083 = vpow2.f32 %v1694_v51 }
 0x3a9   :  { %2085 = vpow2.f32 %v1692_v52 }
 0x3b3   :  { %v2080_v49 = vpop.eup %2079 }
 0x3b4   :  { %v2082_v50 = vpop.eup %2081  ;;  %407 = vrot.lane.b32.xlu1 %v2080_v49, %s2252_s13 }
 0x3b5   :  { %300 = vrot.lane.b32.xlu0 %v2082_v50, %s2252_s13  ;;  %v2084_v53 = vpop.eup %2083 }
 0x3b6   :  { %v2086_v54 = vpop.eup %2085  ;;  %v401_v55 = vadd.f32 1.0, %v2084_v53 }
 0x3b7   :  { %v294_v56 = vadd.f32 1.0, %v2086_v54 }
 0x3b8   :  { %2087 = vrcp.f32 %v401_v55 }
 0x3b9   :  { %2089 = vrcp.f32 %v294_v56 }
 0x3c5   :  { %v2088_v57 = vpop.eup %2087 }
 0x3c6   :  { %v2090_v59 = vpop.eup %2089  ;;  %v405_v63 = vmul.f32 %v2088_v57, %v2381_v24 }
 0x3c7   :  { %v298_v8 = vmul.f32 0.0, %v2090_v59 }
 0x426   :  { %v408_v58 = vpop.permute.xlu1 %407 }
 0x427   :  { %v410_v60 = vmul.f32 %v2088_v57, %v408_v58  ;;  %v301_v61 = vpop.permute.xlu0 %300 }
 0x428   :  { %v303_v62 = vmul.f32 %v2090_v59, %v301_v61 }
 0x429   :  { %412 = vrot.lane.b32.xlu1 %v410_v60, %s2253_s14 }
 0x42a   :  { %305 = vrot.lane.b32.xlu0 %v303_v62, %s2253_s14 }
 0x49b   :  { %v413_v4 = vpop.permute.xlu1 %412 }
 0x49c   :  { %v2463_v9 = vadd.f32 %v413_v4, %v405_v63  ;;  %v306_v11 = vpop.permute.xlu0 %305  ;;  %v2256_v63 = vmov 3   ;;  %v316_v4 = vstv %s315_s5 }
 0x49d   :  { %v2465_v12 = vadd.f32 %v306_v11, %v298_v8  ;;  %v529_v8 = vstv %s1697_s17 }
 0x49e   :  { %2091 = vtanh.f32 %v2463_v9 }
 0x49f   :  { %2093 = vtanh.f32 %v2465_v12 }
 0x4ab   :  { %v2092_v13 = vpop.eup %2091 }
 0x4ac   :  { %v2094_v14 = vpop.eup %2093  ;;  %418 = vrot.lane.b32.xlu1 %v2092_v13, %s2252_s13 }
 0x4ad   :  { %311 = vrot.lane.b32.xlu0 %v2094_v14, %s2252_s13 }
 0x51e   :  { %v419_v16 = vpop.permute.xlu1 %418 }
 0x51f   :  { %v421_v17 = vmul.f32 %v2088_v57, %v419_v16  ;;  %v312_v18 = vpop.permute.xlu0 %311 }
 0x520   :  { %v2471_v19 = vmul.f32 %v2090_v59, %v312_v18 }
 0x521   :  { %423 = vrot.lane.b32.xlu0 %v421_v17, %s2253_s14 }
 0x522   :  { %427 = vrot.lane.b32.xlu1 %v2471_v19, %s2252_s13 }
 0x525   :  { %533 = vperm.xlu0 %2066, %v2332_v3  }
 0x529   :  { %2067 = vset.pattern.permute.xlu0 %v2256_v63 }
 0x593   :  { %v424_v20 = vpop.permute.xlu0 %423 }
 0x594   :  { %1896 = vmatmul.mubr.msk.f32.vlgmr.msra.gmra.mxu1 %vm107_vm1, %v424_v20  ;;  %v428_v21 = vpop.permute.xlu1 %427 }
 0x595   :  { %v430_v22 = vsel %vm107_vm1, %v424_v20, %v428_v21  ;;  %1899 = vmatpush3.msra.mxu1 %v2384_v25  ;;  %1914 = vmatprep.mubr.msk.f32.mxu1 %vm2250_vm0, %v2249_v1 }
 0x596   :  { %1885 = vmatmul.mubr.msk.f32.vlgmr.msra.gmra.mxu0 %vm217_vm2, %v430_v22  ;;  %1900 = vmatprep.subr.mxu1 %v2249_v1 }
 0x597   :  { %1901 = vmatpush3.msra.mxu1 %v2386_v26  ;;  %1918 = vmatpush3.msra.mxu0 %v2322_v0 }
 0x598   :  { %1902 = vmatprep.subr.mxu1 %v2249_v1  ;;  %1919 = vmatprep.subr.mxu0 %v2249_v1 }
 0x599   :  { %1903 = vmatpush3.msra.mxu1 %v2390_v27  ;;  %1920 = vmatpush3.msra.mxu0 %v2328_v2 }
 0x59a   :  { %1904 = vmatprep.subr.mxu1 %v2249_v1  ;;  %1921 = vmatprep.subr.mxu0 %v2249_v1 }
 0x59b   :  { %1905 = vmatpush3.msra.mxu1 %v2394_v28  ;;  %1922 = vmatpush3.msra.mxu0 %v2339_v5 }
 0x59c   :  { %1906 = vmatprep.subr.mxu1 %v2249_v1  ;;  %1923 = vmatprep.subr.mxu0 %v2249_v1 }
 0x59d   :  { %1907 = vmatpush3.msra.mxu1 %v2398_v29  ;;  %1924 = vmatpush3.msra.mxu0 %v2348_v6 }
 0x59e   :  { %1908 = vmatprep.subr.mxu1 %v2249_v1  ;;  %1925 = vmatprep.mubr.msk.f32.mxu0 %vm2250_vm0, %v2249_v1 }
 0x59f   :  { %1909 = vmatpush3.msra.mxu1 %v2402_v30  ;;  %1928 = vmatprep.subr.mxu0 %v2249_v1 }
 0x5a0   :  { %1910 = vmatprep.subr.mxu1 %v2249_v1  ;;  %v534_v23 = vpop.permute.xlu0 %533 }
 0x5a1   :  { %1911 = vmatpush3.msra.mxu1 %v2406_v32  ;;  %v536_v24 = vmul.f32 %v2370_v7, %v534_v23 }
 0x5a2   :  { %1912 = vmatprep.subr.mxu1 %v2249_v1 }
 0x5a3   :  { %1913 = vmatpush3.msra.mxu1 %v2413_v33  ;;  %v537_v34 = vadd.f32 %v2376_v10, %v536_v24 }
 0x5a4   :  { %1947 = vmatprep.subr.mxu1 %v2249_v1 }
 0x654   :  { %v606_v31 = vpop.f32.mrf.mxu1 }
 0x655   :  { %v610_v39 = vadd.f32 %v606_v31, %v537_v34 }
 0x656   :  { %v500_v35 = vpop.f32.mrf.mxu0  ;;  %v1897_v36 = vpop.f32.mrf.mxu1 }
 0x657   :  { %v501_v37 = vadd.f32 %v2455_v42, %v500_v35  ;;  %v1699_v44 = vmul.f32 -1.442695, %v610_v39 }
 0x658   :  { %v1886_v38 = vpop.f32.mrf.mxu0 }
 0x659   :  { %2095 = vtanh.f32 %v501_v37  ;;  %v1696_v43 = vmul.f32 -1.442695, %v501_v37 }
 0x65a   :  { %2097 = vtanh.f32 %v610_v39 }
 0x65b   :  { %2099 = vpow2.f32 %v1696_v43 }
 0x65c   :  { %2101 = vpow2.f32 %v1699_v44 }
 0x666   :  { %v2096_v40 = vpop.eup %2095 }
 0x667   :  { %513 = vrot.lane.b32.xlu1 %v2096_v40, %s2252_s13  ;;  %v2098_v41 = vpop.eup %2097 }
 0x668   :  { %v2100_v45 = vpop.eup %2099 }
 0x669   :  { %v507_v46 = vadd.f32 1.0, %v2100_v45  ;;  %v2102_v47 = vpop.eup %2101 }
 0x66a   :  { %v614_v48 = vadd.f32 1.0, %v2102_v47 }
 0x66b   :  { %620 = vrot.lane.b32.xlu1 %v2098_v41, %s2252_s13  ;;  %2103 = vrcp.f32 %v507_v46 }
 0x66c   :  { %2105 = vrcp.f32 %v614_v48 }
 0x678   :  { %v2104_v49 = vpop.eup %2103 }
 0x679   :  { %v2106_v52 = vpop.eup %2105  ;;  %v511_v55 = vmul.f32 %v2104_v49, %v2465_v12 }
 0x67a   :  { %v618_v58 = vmul.f32 %v2106_v52, %v2463_v9  ;;  %v317_v9 = vmul.f32 %v316_v4, %v2471_v19 }
 0x6d9   :  { %v514_v50 = vpop.permute.xlu1 %513 }
 0x6da   :  { %v516_v51 = vmul.f32 %v2104_v49, %v514_v50 }
 0x6dc   :  { %518 = vrot.lane.b32.xlu0 %v516_v51, %s2253_s14 }
 0x6dd   :  { %v621_v53 = vpop.permute.xlu1 %620 }
 0x6de   :  { %v623_v54 = vmul.f32 %v2106_v52, %v621_v53 }
 0x6e0   :  { %625 = vrot.lane.b32.xlu1 %v623_v54, %s2253_s14 }
 0x74e   :  { %v519_v56 = vpop.permute.xlu0 %518 }
 0x74f   :  { %v2516_v57 = vadd.f32 %v519_v56, %v511_v55 }
 0x751   :  { %2107 = vtanh.f32 %v2516_v57 }
 0x752   :  { %v626_v59 = vpop.permute.xlu1 %625 }
 0x753   :  { %v2520_v60 = vadd.f32 %v626_v59, %v618_v58 }
 0x755   :  { %2109 = vtanh.f32 %v2520_v60 }
 0x75e   :  { %v2108_v61 = vpop.eup %2107 }
 0x75f   :  { %524 = vrot.lane.b32.xlu0 %v2108_v61, %s2252_s13 }
 0x762   :  { %v2110_v62 = vpop.eup %2109 }
 0x763   :  { %631 = vrot.lane.b32.xlu1 %v2110_v62, %s2252_s13  ;;  %v742_v62 = vstv %s1702_s18 }
 0x7d1   :  { %v525_v11 = vpop.permute.xlu0 %524 }
 0x7d2   :  { %v527_v12 = vmul.f32 %v2104_v49, %v525_v11 }
 0x7d4   :  { %v530_v13 = vmul.f32 %v529_v8, %v527_v12  ;;  %640 = vrot.lane.b32.xlu1 %v527_v12, %s2252_s13 }
 0x7d5   :  { %v632_v14 = vpop.permute.xlu1 %631 }
 0x7d6   :  { %v2527_v15 = vadd.f32 %v530_v13, %v317_v9  ;;  %v634_v16 = vmul.f32 %v2106_v52, %v632_v14 }
 0x7d8   :  { %636 = vrot.lane.b32.xlu0 %v634_v16, %s2253_s14 }
 0x7dc   :  { %746 = vperm.xlu0 %2067, %v2332_v3  }
 0x846   :  { %v641_v17 = vpop.permute.xlu1 %640 }
 0x84a   :  { %v637_v18 = vpop.permute.xlu0 %636 }
 0x84b   :  { %v643_v20 = vsel %vm107_vm1, %v637_v18, %v641_v17  ;;  %1926 = vmatmul.mubr.msk.f32.vlgmr.msra.gmra.mxu0 %vm107_vm1, %v637_v18 }
 0x84c   :  { %1915 = vmatmul.mubr.msk.f32.vlgmr.msra.gmra.mxu1 %vm217_vm2, %v643_v20  ;;  %1929 = vmatpush3.msra.mxu0 %v2384_v25 }
 0x84d   :  { %1930 = vmatprep.subr.mxu0 %v2249_v1  ;;  %1948 = vmatpush3.msra.mxu1 %v2322_v0 }
 0x84e   :  { %1931 = vmatpush3.msra.mxu0 %v2386_v26  ;;  %1949 = vmatprep.subr.mxu1 %v2249_v1 }
 0x84f   :  { %1932 = vmatprep.subr.mxu0 %v2249_v1  ;;  %1950 = vmatpush3.msra.mxu1 %v2328_v2 }
 0x850   :  { %1933 = vmatpush3.msra.mxu0 %v2390_v27  ;;  %1951 = vmatprep.subr.mxu1 %v2249_v1 }
 0x851   :  { %1934 = vmatprep.subr.mxu0 %v2249_v1  ;;  %1952 = vmatpush3.msra.mxu1 %v2339_v5 }
 0x852   :  { %1935 = vmatpush3.msra.mxu0 %v2394_v28  ;;  %1953 = vmatprep.subr.mxu1 %v2249_v1 }
 0x853   :  { %1936 = vmatprep.subr.mxu0 %v2249_v1  ;;  %1954 = vmatpush3.msra.mxu1 %v2348_v6 }
 0x854   :  { %1937 = vmatpush3.msra.mxu0 %v2398_v29  ;;  %1955 = vmatprep.mubr.msk.f32.mxu1 %vm2250_vm0, %v2249_v1 }
 0x855   :  { %1938 = vmatprep.subr.mxu0 %v2249_v1  ;;  %1944 = vmatprep.mubr.msk.f32.mxu0 %vm2250_vm0, %v2249_v1 }
 0x856   :  { %1939 = vmatpush3.msra.mxu0 %v2402_v30  ;;  %1958 = vmatprep.subr.mxu1 %v2249_v1 }
 0x857   :  { %1940 = vmatprep.subr.mxu0 %v2249_v1  ;;  %v747_v19 = vpop.permute.xlu0 %746 }
 0x858   :  { %1941 = vmatpush3.msra.mxu0 %v2406_v32  ;;  %v749_v21 = vmul.f32 %v2370_v7, %v747_v19 }
 0x859   :  { %1942 = vmatprep.subr.mxu0 %v2249_v1 }
 0x85a   :  { %1943 = vmatpush3.msra.mxu0 %v2413_v33  ;;  %v750_v22 = vadd.f32 %v2376_v10, %v749_v21 }
 0x85b   :  { %1977 = vmatprep.subr.mxu0 %v2249_v1 }
 0x90b   :  { %v819_v23 = vpop.f32.mrf.mxu0 }
 0x90c   :  { %v713_v24 = vpop.f32.mrf.mxu1  ;;  %v823_v36 = vadd.f32 %v819_v23, %v750_v22 }
 0x90d   :  { %v714_v31 = vadd.f32 %v2455_v42, %v713_v24  ;;  %v1927_v34 = vpop.f32.mrf.mxu0 }
 0x90e   :  { %v1916_v35 = vpop.f32.mrf.mxu1  ;;  %v1704_v40 = vmul.f32 -1.442695, %v823_v36 }
 0x90f   :  { %2111 = vtanh.f32 %v714_v31  ;;  %v1701_v39 = vmul.f32 -1.442695, %v714_v31 }
 0x910   :  { %2113 = vtanh.f32 %v823_v36 }
 0x911   :  { %2115 = vpow2.f32 %v1701_v39 }
 0x912   :  { %2117 = vpow2.f32 %v1704_v40 }
 0x91c   :  { %v2112_v37 = vpop.eup %2111 }
 0x91d   :  { %726 = vrot.lane.b32.xlu1 %v2112_v37, %s2252_s13  ;;  %v2114_v38 = vpop.eup %2113 }
 0x91e   :  { %v2116_v41 = vpop.eup %2115 }
 0x91f   :  { %v720_v43 = vadd.f32 1.0, %v2116_v41  ;;  %v2118_v44 = vpop.eup %2117 }
 0x920   :  { %v827_v45 = vadd.f32 1.0, %v2118_v44 }
 0x921   :  { %833 = vrot.lane.b32.xlu1 %v2114_v38, %s2252_s13  ;;  %2119 = vrcp.f32 %v720_v43 }
 0x922   :  { %2121 = vrcp.f32 %v827_v45 }
 0x92e   :  { %v2120_v46 = vpop.eup %2119 }
 0x92f   :  { %v2122_v49 = vpop.eup %2121  ;;  %v724_v52 = vmul.f32 %v2120_v46, %v2516_v57  ;;  %v2257_v57 = vmov 4  }
 0x930   :  { %v831_v55 = vmul.f32 %v2122_v49, %v2520_v60  ;;  %2068 = vset.pattern.permute.xlu0 %v2257_v57 }
 0x98f   :  { %v727_v47 = vpop.permute.xlu1 %726 }
 0x990   :  { %v729_v48 = vmul.f32 %v2120_v46, %v727_v47 }
 0x992   :  { %731 = vrot.lane.b32.xlu0 %v729_v48, %s2253_s14 }
 0x993   :  { %v834_v50 = vpop.permute.xlu1 %833 }
 0x994   :  { %v836_v51 = vmul.f32 %v2122_v49, %v834_v50 }
 0x996   :  { %838 = vrot.lane.b32.xlu1 %v836_v51, %s2253_s14 }
 0xa04   :  { %v732_v53 = vpop.permute.xlu0 %731 }
 0xa05   :  { %v2570_v54 = vadd.f32 %v732_v53, %v724_v52 }
 0xa07   :  { %2123 = vtanh.f32 %v2570_v54 }
 0xa08   :  { %v839_v56 = vpop.permute.xlu1 %838 }
 0xa09   :  { %v2574_v58 = vadd.f32 %v839_v56, %v831_v55  ;;  %v955_v56 = vstv %s1707_s19 }
 0xa0b   :  { %2125 = vtanh.f32 %v2574_v58 }
 0xa14   :  { %v2124_v59 = vpop.eup %2123 }
 0xa15   :  { %737 = vrot.lane.b32.xlu0 %v2124_v59, %s2252_s13 }
 0xa18   :  { %v2126_v61 = vpop.eup %2125 }
 0xa19   :  { %844 = vrot.lane.b32.xlu1 %v2126_v61, %s2252_s13 }
 0xa87   :  { %v738_v63 = vpop.permute.xlu0 %737 }
 0xa88   :  { %v740_v4 = vmul.f32 %v2120_v46, %v738_v63 }
 0xa8a   :  { %v743_v8 = vmul.f32 %v742_v62, %v740_v4  ;;  %853 = vrot.lane.b32.xlu1 %v740_v4, %s2252_s13 }
 0xa8b   :  { %v845_v60 = vpop.permute.xlu1 %844 }
 0xa8c   :  { %v2581_v11 = vadd.f32 %v743_v8, %v2527_v15  ;;  %v847_v12 = vmul.f32 %v2122_v49, %v845_v60 }
 0xa8e   :  { %849 = vrot.lane.b32.xlu0 %v847_v12, %s2253_s14 }
 0xa92   :  { %959 = vperm.xlu0 %2068, %v2332_v3  }
 0xafc   :  { %v854_v9 = vpop.permute.xlu1 %853 }
 0xb00   :  { %v850_v13 = vpop.permute.xlu0 %849 }
 0xb01   :  { %v856_v14 = vsel %vm107_vm1, %v850_v13, %v854_v9  ;;  %1956 = vmatmul.mubr.msk.f32.vlgmr.msra.gmra.mxu1 %vm107_vm1, %v850_v13 }
 0xb02   :  { %1945 = vmatmul.mubr.msk.f32.vlgmr.msra.gmra.mxu0 %vm217_vm2, %v856_v14  ;;  %1959 = vmatpush3.msra.mxu1 %v2384_v25 }
 0xb03   :  { %1960 = vmatprep.subr.mxu1 %v2249_v1  ;;  %1978 = vmatpush3.msra.mxu0 %v2322_v0 }
 0xb04   :  { %1961 = vmatpush3.msra.mxu1 %v2386_v26  ;;  %1979 = vmatprep.subr.mxu0 %v2249_v1 }
 0xb05   :  { %1962 = vmatprep.subr.mxu1 %v2249_v1  ;;  %1980 = vmatpush3.msra.mxu0 %v2328_v2 }
 0xb06   :  { %1963 = vmatpush3.msra.mxu1 %v2390_v27  ;;  %1981 = vmatprep.subr.mxu0 %v2249_v1 }
 0xb07   :  { %1964 = vmatprep.subr.mxu1 %v2249_v1  ;;  %1982 = vmatpush3.msra.mxu0 %v2339_v5 }
 0xb08   :  { %1965 = vmatpush3.msra.mxu1 %v2394_v28  ;;  %1983 = vmatprep.subr.mxu0 %v2249_v1 }
 0xb09   :  { %1966 = vmatprep.subr.mxu1 %v2249_v1  ;;  %1984 = vmatpush3.msra.mxu0 %v2348_v6 }
 0xb0a   :  { %1967 = vmatpush3.msra.mxu1 %v2398_v29  ;;  %1985 = vmatprep.mubr.msk.f32.mxu0 %vm2250_vm0, %v2249_v1 }
 0xb0b   :  { %1968 = vmatprep.subr.mxu1 %v2249_v1  ;;  %1974 = vmatprep.mubr.msk.f32.mxu1 %vm2250_vm0, %v2249_v1 }
 0xb0c   :  { %1969 = vmatpush3.msra.mxu1 %v2402_v30  ;;  %1988 = vmatprep.subr.mxu0 %v2249_v1 }
 0xb0d   :  { %1970 = vmatprep.subr.mxu1 %v2249_v1  ;;  %v960_v15 = vpop.permute.xlu0 %959 }
 0xb0e   :  { %1971 = vmatpush3.msra.mxu1 %v2406_v32  ;;  %v962_v16 = vmul.f32 %v2370_v7, %v960_v15 }
 0xb0f   :  { %1972 = vmatprep.subr.mxu1 %v2249_v1 }
 0xb10   :  { %1973 = vmatpush3.msra.mxu1 %v2413_v33  ;;  %v963_v17 = vadd.f32 %v2376_v10, %v962_v16 }
 0xb11   :  { %2007 = vmatprep.subr.mxu1 %v2249_v1 }
 0xbc1   :  { %v1032_v18 = vpop.f32.mrf.mxu1 }
 0xbc2   :  { %v926_v20 = vpop.f32.mrf.mxu0  ;;  %v1036_v23 = vadd.f32 %v1032_v18, %v963_v17 }
 0xbc3   :  { %v927_v19 = vadd.f32 %v2455_v42, %v926_v20  ;;  %v1957_v21 = vpop.f32.mrf.mxu1 }
 0xbc4   :  { %v1946_v22 = vpop.f32.mrf.mxu0  ;;  %v1709_v35 = vmul.f32 -1.442695, %v1036_v23 }
 0xbc5   :  { %2127 = vtanh.f32 %v927_v19  ;;  %v1706_v34 = vmul.f32 -1.442695, %v927_v19 }
 0xbc6   :  { %2129 = vtanh.f32 %v1036_v23 }
 0xbc7   :  { %2131 = vpow2.f32 %v1706_v34 }
 0xbc8   :  { %2133 = vpow2.f32 %v1709_v35 }
 0xbd2   :  { %v2128_v24 = vpop.eup %2127 }
 0xbd3   :  { %939 = vrot.lane.b32.xlu1 %v2128_v24, %s2252_s13  ;;  %v2130_v31 = vpop.eup %2129 }
 0xbd4   :  { %v2132_v36 = vpop.eup %2131 }
 0xbd5   :  { %v933_v37 = vadd.f32 1.0, %v2132_v36  ;;  %v2134_v38 = vpop.eup %2133 }
 0xbd6   :  { %v1040_v39 = vadd.f32 1.0, %v2134_v38 }
 0xbd7   :  { %1046 = vrot.lane.b32.xlu1 %v2130_v31, %s2252_s13  ;;  %2135 = vrcp.f32 %v933_v37 }
 0xbd8   :  { %2137 = vrcp.f32 %v1040_v39 }
 0xbe4   :  { %v2136_v40 = vpop.eup %2135 }
 0xbe5   :  { %v2138_v44 = vpop.eup %2137  ;;  %v937_v47 = vmul.f32 %v2136_v40, %v2570_v54  ;;  %v2258_v54 = vmov 5  }
 0xbe6   :  { %v1044_v50 = vmul.f32 %v2138_v44, %v2574_v58  ;;  %2069 = vset.pattern.permute.xlu0 %v2258_v54 }
 0xc45   :  { %v940_v41 = vpop.permute.xlu1 %939 }
 0xc46   :  { %v942_v43 = vmul.f32 %v2136_v40, %v940_v41 }
 0xc48   :  { %944 = vrot.lane.b32.xlu0 %v942_v43, %s2253_s14  ;;  %v2259_v43 = vmov 6  }
 0xc49   :  { %v1047_v45 = vpop.permute.xlu1 %1046 }
 0xc4a   :  { %v1049_v46 = vmul.f32 %v2138_v44, %v1047_v45 }
 0xc4c   :  { %1051 = vrot.lane.b32.xlu1 %v1049_v46, %s2253_s14 }
 0xcba   :  { %v945_v48 = vpop.permute.xlu0 %944 }
 0xcbb   :  { %v2624_v49 = vadd.f32 %v945_v48, %v937_v47 }
 0xcbd   :  { %2139 = vtanh.f32 %v2624_v49 }
 0xcbe   :  { %v1052_v51 = vpop.permute.xlu1 %1051 }
 0xcbf   :  { %v2628_v52 = vadd.f32 %v1052_v51, %v1044_v50  ;;  %v2183_v51 = vld [vmem:[#allocation3] sm:$0xff] }
 0xcc1   :  { %2141 = vtanh.f32 %v2628_v52 }
 0xcca   :  { %v2140_v53 = vpop.eup %2139 }
 0xccb   :  { %950 = vrot.lane.b32.xlu0 %v2140_v53, %s2252_s13 }
 0xcce   :  { %v2142_v55 = vpop.eup %2141 }
 0xccf   :  { %1057 = vrot.lane.b32.xlu1 %v2142_v55, %s2252_s13 }
 0xd3d   :  { %v951_v59 = vpop.permute.xlu0 %950 }
 0xd3e   :  { %v953_v61 = vmul.f32 %v2136_v40, %v951_v59 }
 0xd40   :  { %v956_v57 = vmul.f32 %v955_v56, %v953_v61  ;;  %1066 = vrot.lane.b32.xlu1 %v953_v61, %s2252_s13 }
 0xd41   :  { %v1058_v58 = vpop.permute.xlu1 %1057 }
 0xd42   :  { %v2635_v62 = vadd.f32 %v956_v57, %v2581_v11  ;;  %v1060_v63 = vmul.f32 %v2138_v44, %v1058_v58  ;;  %v1168_v44 = vstv %s1712_s20 }
 0xd44   :  { %1062 = vrot.lane.b32.xlu0 %v1060_v63, %s2253_s14 }
 0xd48   :  { %1172 = vperm.xlu0 %2069, %v2332_v3  }
 0xd4c   :  { %2070 = vset.pattern.permute.xlu0 %v2259_v43 }
 0xdb2   :  { %v1067_v4 = vpop.permute.xlu1 %1066 }
 0xdb6   :  { %v1063_v8 = vpop.permute.xlu0 %1062 }
 0xdb7   :  { %v1069_v60 = vsel %vm107_vm1, %v1063_v8, %v1067_v4  ;;  %1986 = vmatmul.mubr.msk.f32.vlgmr.msra.gmra.mxu0 %vm107_vm1, %v1063_v8 }
 0xdb8   :  { %1975 = vmatmul.mubr.msk.f32.vlgmr.msra.gmra.mxu1 %vm217_vm2, %v1069_v60  ;;  %1989 = vmatpush3.msra.mxu0 %v2384_v25 }
 0xdb9   :  { %1990 = vmatprep.subr.mxu0 %v2249_v1  ;;  %2008 = vmatpush3.msra.mxu1 %v2322_v0 }
 0xdba   :  { %1991 = vmatpush3.msra.mxu0 %v2386_v26  ;;  %2009 = vmatprep.subr.mxu1 %v2249_v1 }
 0xdbb   :  { %1992 = vmatprep.subr.mxu0 %v2249_v1  ;;  %2010 = vmatpush3.msra.mxu1 %v2328_v2 }
 0xdbc   :  { %1993 = vmatpush3.msra.mxu0 %v2390_v27  ;;  %2011 = vmatprep.subr.mxu1 %v2249_v1 }
 0xdbd   :  { %1994 = vmatprep.subr.mxu0 %v2249_v1  ;;  %2012 = vmatpush3.msra.mxu1 %v2339_v5 }
 0xdbe   :  { %1995 = vmatpush3.msra.mxu0 %v2394_v28  ;;  %2013 = vmatprep.subr.mxu1 %v2249_v1 }
 0xdbf   :  { %1996 = vmatprep.subr.mxu0 %v2249_v1  ;;  %2014 = vmatpush3.msra.mxu1 %v2348_v6 }
 0xdc0   :  { %1997 = vmatpush3.msra.mxu0 %v2398_v29  ;;  %2015 = vmatprep.mubr.msk.f32.mxu1 %vm2250_vm0, %v2249_v1 }
 0xdc1   :  { %1998 = vmatprep.subr.mxu0 %v2249_v1  ;;  %2004 = vmatprep.mubr.msk.f32.mxu0 %vm2250_vm0, %v2249_v1 }
 0xdc2   :  { %1999 = vmatpush3.msra.mxu0 %v2402_v30  ;;  %2018 = vmatprep.subr.mxu1 %v2249_v1 }
 0xdc3   :  { %2000 = vmatprep.subr.mxu0 %v2249_v1  ;;  %v1173_v0 = vpop.permute.xlu0 %1172 }
 0xdc4   :  { %2001 = vmatpush3.msra.mxu0 %v2406_v32  ;;  %v1175_v2 = vmul.f32 %v2370_v7, %v1173_v0 }
 0xdc5   :  { %2002 = vmatprep.subr.mxu0 %v2249_v1 }
 0xdc6   :  { %2003 = vmatpush3.msra.mxu0 %v2413_v33  ;;  %v1176_v3 = vadd.f32 %v2376_v10, %v1175_v2 }
 0xdc7   :  { %2037 = vmatprep.subr.mxu0 %v2249_v1 }
 0xe77   :  { %v1245_v5 = vpop.f32.mrf.mxu0 }
 0xe78   :  { %v1139_v6 = vpop.f32.mrf.mxu1  ;;  %v1249_v13 = vadd.f32 %v1245_v5, %v1176_v3 }
 0xe79   :  { %v1140_v11 = vadd.f32 %v2455_v42, %v1139_v6  ;;  %v1987_v12 = vpop.f32.mrf.mxu0 }
 0xe7a   :  { %v1976_v9 = vpop.f32.mrf.mxu1  ;;  %v1714_v17 = vmul.f32 -1.442695, %v1249_v13 }
 0xe7b   :  { %2143 = vtanh.f32 %v1140_v11  ;;  %v1711_v16 = vmul.f32 -1.442695, %v1140_v11 }
 0xe7c   :  { %2145 = vtanh.f32 %v1249_v13 }
 0xe7d   :  { %2147 = vpow2.f32 %v1711_v16 }
 0xe7e   :  { %2149 = vpow2.f32 %v1714_v17 }
 0xe88   :  { %v2144_v14 = vpop.eup %2143 }
 0xe89   :  { %1152 = vrot.lane.b32.xlu1 %v2144_v14, %s2252_s13  ;;  %v2146_v15 = vpop.eup %2145 }
 0xe8a   :  { %v2148_v7 = vpop.eup %2147 }
 0xe8b   :  { %v1146_v10 = vadd.f32 1.0, %v2148_v7  ;;  %v2150_v18 = vpop.eup %2149 }
 0xe8c   :  { %v1253_v20 = vadd.f32 1.0, %v2150_v18 }
 0xe8d   :  { %1259 = vrot.lane.b32.xlu1 %v2146_v15, %s2252_s13  ;;  %2151 = vrcp.f32 %v1146_v10 }
 0xe8e   :  { %2153 = vrcp.f32 %v1253_v20 }
 0xe9a   :  { %v2152_v19 = vpop.eup %2151 }
 0xe9b   :  { %v2154_v23 = vpop.eup %2153  ;;  %v1150_v34 = vmul.f32 %v2152_v19, %v2624_v49 }
 0xe9c   :  { %v1257_v37 = vmul.f32 %v2154_v23, %v2628_v52 }
 0xefb   :  { %v1153_v21 = vpop.permute.xlu1 %1152 }
 0xefc   :  { %v1155_v22 = vmul.f32 %v2152_v19, %v1153_v21 }
 0xefe   :  { %1157 = vrot.lane.b32.xlu0 %v1155_v22, %s2253_s14 }
 0xeff   :  { %v1260_v24 = vpop.permute.xlu1 %1259 }
 0xf00   :  { %v1262_v31 = vmul.f32 %v2154_v23, %v1260_v24 }
 0xf02   :  { %1264 = vrot.lane.b32.xlu1 %v1262_v31, %s2253_s14 }
 0xf70   :  { %v1158_v35 = vpop.permute.xlu0 %1157 }
 0xf71   :  { %v2678_v36 = vadd.f32 %v1158_v35, %v1150_v34 }
 0xf73   :  { %2155 = vtanh.f32 %v2678_v36 }
 0xf74   :  { %v1265_v38 = vpop.permute.xlu1 %1264 }
 0xf75   :  { %v2682_v39 = vadd.f32 %v1265_v38, %v1257_v37 }
 0xf77   :  { %2157 = vtanh.f32 %v2682_v39 }
 0xf80   :  { %v2156_v40 = vpop.eup %2155 }
 0xf81   :  { %1163 = vrot.lane.b32.xlu0 %v2156_v40, %s2252_s13 }
 0xf84   :  { %v2158_v41 = vpop.eup %2157 }
 0xf85   :  { %1270 = vrot.lane.b32.xlu1 %v2158_v41, %s2252_s13 }
 0xff3   :  { %v1164_v45 = vpop.permute.xlu0 %1163 }
 0xff4   :  { %v1166_v46 = vmul.f32 %v2152_v19, %v1164_v45 }
 0xff6   :  { %v1169_v47 = vmul.f32 %v1168_v44, %v1166_v46  ;;  %1279 = vrot.lane.b32.xlu1 %v1166_v46, %s2252_s13 }
 0xff7   :  { %v1271_v48 = vpop.permute.xlu1 %1270 }
 0xff8   :  { %v2689_v49 = vadd.f32 %v1169_v47, %v2635_v62  ;;  %v1273_v50 = vmul.f32 %v2154_v23, %v1271_v48 }
 0xffa   :  { %1275 = vrot.lane.b32.xlu0 %v1273_v50, %s2253_s14  ;;  %v1598_v50 = vld [vmem:[%s2767_s6 + $0x8] sm:$0xff] }
 0xffe   :  { %1385 = vperm.xlu0 %2070, %v2183_v51   ;;  %v1597_v51 = vld [vmem:[%s2767_s6] sm:$0xff] }
0x1068   :  { %v1280_v52 = vpop.permute.xlu1 %1279 }
0x106c   :  { %v1276_v53 = vpop.permute.xlu0 %1275 }
0x106d   :  { %v1282_v55 = vsel %vm107_vm1, %v1276_v53, %v1280_v52  ;;  %2016 = vmatmul.mubr.msk.f32.vlgmr.msra.gmra.mxu1 %vm107_vm1, %v1276_v53  ;;  %v1594_v53 = vstv %s1722_s29 }
0x106e   :  { %2005 = vmatmul.mubr.msk.f32.vlgmr.msra.gmra.mxu0 %vm217_vm2, %v1282_v55  ;;  %2019 = vmatpush3.msra.mxu1 %v2384_v25 }
0x106f   :  { %2020 = vmatprep.subr.mxu1 %v2249_v1  ;;  %2034 = vmatprep.mubr.msk.f32.mxu1 %vm2250_vm0, %v2249_v1 }
0x1070   :  { %2021 = vmatpush3.msra.mxu1 %v2386_v26  ;;  %2045 = vmatprep.mubr.msk.f32.mxu0 %vm2250_vm0, %v2249_v1  ;;  %v2184_v26 = vld [vmem:[%s2762_s1] ss:$0 sm:$0xff]  ;;  %s1717_s1 = sld [smem:[#allocation8 + $0x5]] }
0x1071   :  { %2022 = vmatprep.subr.mxu1 %v2249_v1 }
0x1072   :  { %2023 = vmatpush3.msra.mxu1 %v2390_v27 }
0x1073   :  { %2024 = vmatprep.subr.mxu1 %v2249_v1 }
0x1074   :  { %2025 = vmatpush3.msra.mxu1 %v2394_v28  ;;  %v2185_v28 = vld [vmem:[%s2764_s3] ss:$0 sm:$0xff] }
0x1075   :  { %2026 = vmatprep.subr.mxu1 %v2249_v1 }
0x1076   :  { %2027 = vmatpush3.msra.mxu1 %v2398_v29  ;;  %v1381_v10 = vstv %s1717_s1 }
0x1077   :  { %2028 = vmatprep.subr.mxu1 %v2249_v1 }
0x1078   :  { %2029 = vmatpush3.msra.mxu1 %v2402_v30 }
0x1079   :  { %2030 = vmatprep.subr.mxu1 %v2249_v1  ;;  %v1386_v25 = vpop.permute.xlu0 %1385 }
0x107a   :  { %2031 = vmatpush3.msra.mxu1 %v2406_v32  ;;  %v1388_v27 = vmul.f32 %v2184_v26, %v1386_v25 }
0x107b   :  { %2032 = vmatprep.subr.mxu1 %v2249_v1 }
0x107c   :  { %2033 = vmatpush3.msra.mxu1 %v2413_v33  ;;  %v1389_v29 = vadd.f32 %v2185_v28, %v1388_v27 }
0x112d   :  { %v1458_v30 = vpop.f32.mrf.mxu1 }
0x112e   :  { %v1352_v54 = vpop.f32.mrf.mxu0  ;;  %v1462_v61 = vadd.f32 %v1458_v30, %v1389_v29  ;;  %v1602_v29 = vstv %s2769_s8 }
0x112f   :  { %v1353_v56 = vadd.f32 %v2455_v42, %v1352_v54  ;;  %v2017_v32 = vpop.f32.mrf.mxu1 }
0x1130   :  { %v2006_v59 = vpop.f32.mrf.mxu0  ;;  %v1719_v62 = vmul.f32 -1.442695, %v1462_v61 }
0x1131   :  { %2159 = vtanh.f32 %v1353_v56  ;;  %v1716_v58 = vmul.f32 -1.442695, %v1353_v56 }
0x1132   :  { %2161 = vtanh.f32 %v1462_v61 }
0x1133   :  { %2163 = vpow2.f32 %v1716_v58 }
0x1134   :  { %2165 = vpow2.f32 %v1719_v62 }
0x113e   :  { %v2160_v33 = vpop.eup %2159 }
0x113f   :  { %1365 = vrot.lane.b32.xlu1 %v2160_v33, %s2252_s13  ;;  %v2162_v57 = vpop.eup %2161 }
0x1140   :  { %v2164_v63 = vpop.eup %2163 }
0x1141   :  { %v1359_v4 = vadd.f32 1.0, %v2164_v63  ;;  %v2166_v8 = vpop.eup %2165 }
0x1142   :  { %v1466_v60 = vadd.f32 1.0, %v2166_v8 }
0x1143   :  { %1472 = vrot.lane.b32.xlu1 %v2162_v57, %s2252_s13  ;;  %2167 = vrcp.f32 %v1359_v4 }
0x1144   :  { %2169 = vrcp.f32 %v1466_v60 }
0x1150   :  { %v2168_v0 = vpop.eup %2167 }
0x1151   :  { %v2170_v5 = vpop.eup %2169  ;;  %v1363_v12 = vmul.f32 %v2168_v0, %v2678_v36 }
0x1152   :  { %v1470_v14 = vmul.f32 %v2170_v5, %v2682_v39 }
0x11b1   :  { %v1366_v2 = vpop.permute.xlu1 %1365 }
0x11b2   :  { %v1368_v3 = vmul.f32 %v2168_v0, %v1366_v2 }
0x11b4   :  { %1370 = vrot.lane.b32.xlu0 %v1368_v3, %s2253_s14 }
0x11b5   :  { %v1473_v6 = vpop.permute.xlu1 %1472 }
0x11b6   :  { %v1475_v11 = vmul.f32 %v2170_v5, %v1473_v6 }
0x11b8   :  { %1477 = vrot.lane.b32.xlu1 %v1475_v11, %s2253_s14 }
0x1226   :  { %v1371_v9 = vpop.permute.xlu0 %1370 }
0x1227   :  { %v1373_v13 = vadd.f32 %v1371_v9, %v1363_v12 }
0x1229   :  { %2171 = vtanh.f32 %v1373_v13 }
0x122a   :  { %v1478_v15 = vpop.permute.xlu1 %1477 }
0x122b   :  { %v1480_v16 = vadd.f32 %v1478_v15, %v1470_v14 }
0x122d   :  { %2173 = vtanh.f32 %v1480_v16 }
0x1236   :  { %v2172_v17 = vpop.eup %2171 }
0x1237   :  { %1376 = vrot.lane.b32.xlu0 %v2172_v17, %s2252_s13 }
0x123a   :  { %v2174_v7 = vpop.eup %2173 }
0x123b   :  { %1483 = vrot.lane.b32.xlu1 %v2174_v7, %s2252_s13 }
0x12a9   :  { %v1377_v18 = vpop.permute.xlu0 %1376 }
0x12aa   :  { %v1379_v20 = vmul.f32 %v2168_v0, %v1377_v18 }
0x12ac   :  { %v1382_v19 = vmul.f32 %v1381_v10, %v1379_v20  ;;  %1492 = vrot.lane.b32.xlu1 %v1379_v20, %s2252_s13 }
0x12ad   :  { %v1484_v21 = vpop.permute.xlu1 %1483 }
0x12ae   :  { %v1383_v22 = vadd.f32 %v1382_v19, %v2689_v49  ;;  %v1486_v23 = vmul.f32 %v2170_v5, %v1484_v21  ;;  %v1599_v49 = vld [vmem:[%s2767_s6 + $0x10] sm:$0xff] }
0x12b0   :  { %1488 = vrot.lane.b32.xlu0 %v1486_v23, %s2253_s14 }
0x131e   :  { %v1493_v24 = vpop.permute.xlu1 %1492 }
0x1322   :  { %v1489_v31 = vpop.permute.xlu0 %1488 }
0x1323   :  { %v1495_v34 = vsel %vm107_vm1, %v1489_v31, %v1493_v24 }
0x1324   :  { %2035 = vmatmul.mubr.msk.f32.vlgmr.msra.gmra.mxu1 %vm217_vm2, %v1495_v34 }
0x13e4   :  { %v1565_v35 = vpop.f32.mrf.mxu1 }
0x13e5   :  { %v1566_v36 = vadd.f32 %v2455_v42, %v1565_v35  ;;  %v1600_v42 = vld [vmem:[%s2767_s6 + $0x18] sm:$0xff] }
0x13e6   :  { %v2036_v37 = vpop.f32.mrf.mxu1  ;;  %2038 = vmatpush3.msra.mxu0 %v1600_v42 }
0x13e7   :  { %2175 = vtanh.f32 %v1566_v36  ;;  %v1721_v39 = vmul.f32 -1.442695, %v1566_v36  ;;  %2039 = vmatprep.subr.mxu0 %v2249_v1 }
0x13e8   :  { %2040 = vmatpush3.msra.mxu0 %v1599_v49 }
0x13e9   :  { %2177 = vpow2.f32 %v1721_v39  ;;  %2041 = vmatprep.subr.mxu0 %v2249_v1 }
0x13ea   :  { %2042 = vmatpush3.msra.mxu0 %v1598_v50 }
0x13eb   :  { %2043 = vmatprep.subr.mxu0 %v2249_v1 }
0x13ec   :  { %2044 = vmatpush3.msra.mxu0 %v1597_v51 }
0x13f4   :  { %v2176_v38 = vpop.eup %2175 }
0x13f5   :  { %1578 = vrot.lane.b32.xlu0 %v2176_v38, %s2252_s13 }
0x13f6   :  { %v2178_v40 = vpop.eup %2177 }
0x13f7   :  { %v1572_v41 = vadd.f32 1.0, %v2178_v40 }
0x13f9   :  { %2179 = vrcp.f32 %v1572_v41 }
0x1406   :  { %v2180_v43 = vpop.eup %2179 }
0x1407   :  { %v1576_v46 = vmul.f32 %v2180_v43, %v1373_v13 }
0x1467   :  { %v1579_v44 = vpop.permute.xlu0 %1578 }
0x1468   :  { %v1581_v45 = vmul.f32 %v2180_v43, %v1579_v44 }
0x146a   :  { %1583 = vrot.lane.b32.xlu1 %v1581_v45, %s2253_s14 }
0x14dc   :  { %v1584_v47 = vpop.permute.xlu1 %1583 }
0x14dd   :  { %v1586_v48 = vadd.f32 %v1584_v47, %v1576_v46 }
0x14df   :  { %2181 = vtanh.f32 %v1586_v48 }
0x14ec   :  { %v2182_v52 = vpop.eup %2181 }
0x14ed   :  { %1589 = vrot.lane.b32.xlu0 %v2182_v52, %s2252_s13 }
0x155f   :  { %v1590_v55 = vpop.permute.xlu0 %1589 }
0x1560   :  { %v1592_v25 = vmul.f32 %v2180_v43, %v1590_v55 }
0x1562   :  { %v1595_v26 = vmul.f32 %v1594_v53, %v1592_v25 }
0x1564   :  { %v1596_v27 = vadd.f32 %v1595_v26, %v1383_v22 }
0x1566   :  { %1604 = vrot.lane.b32.xlu1 %v1596_v27, %s2253_s14 }
0x15d8   :  { %v1605_v28 = vpop.permute.xlu1 %1604 }
0x15d9   :  { %2046 = vmatmul.mubr.msk.f32.vlgmr.msra.gmra.mxu0 %vm107_vm1, %v1605_v28 }
0x1699   :  { %v1674_v30 = vpop.f32.mrf.mxu0 }
0x169a   :  { %v1675_v1 = vadd.f32 %v1674_v30, %v1602_v29 }
0x169b   :  { %v2047_v54 = vpop.f32.mrf.mxu0 }
0x169c   :  { %1679 = vst.msk [vmem:[%s2770_s9] sm:$0xff] %vm1678_vm3, %v1675_v1 }
0x169d   :  { %1684 = vsyncpa [#allocation4], 1 }
0x169e   :  { %1685 = vsyncpa [#allocation7], 1 }
0x169f   :  { %1686 = vsyncpa [#allocation5], 1 }

</bundles_post_ra>
